<compile_context>
chip_gen: v5e
topology: v5e:2x2
jax: 0.10.0
libtpu: 0.0.40
codegen_flags: <defaults>
</compile_context>

<pallas_src>
import functools
import math

import jax
import jax.numpy as jnp
from jax.experimental import pallas as pl
from jax.experimental.pallas import tpu as pltpu

_NEG_BIG = -1e30  # large finite negative instead of -inf (avoids inf-inf = NaN)


# ----------------------------------------------------------------------------
# Hardware / tiling helpers
# ----------------------------------------------------------------------------
def _vmem_capacity_bytes():
    """Per-TensorCore VMEM capacity (v5e/v6e: 128 MiB, v7x: 64 MiB)."""
    try:
        info = pltpu.get_tpu_info()
        cap = getattr(info, "vmem_capacity_bytes", None)
        if cap:
            return int(cap)
    except Exception:
        pass
    return 64 * 1024 * 1024  # conservative default (v7x)


def _swap01(x):
    """(A, B, C) -> (B, A, C); lane (last) dim untouched.  On-chip leading-dim swap."""
    if hasattr(pltpu, "einshape"):
        return pltpu.einshape("abc->bac", x)
    return jnp.swapaxes(x, 0, 1)


def _row_tile(r, h, budget):
    """Row tile for the LN+QKV kernel: largest multiple-of-8 divisor of r that fits
    the VMEM budget, preferring >= 2 grid steps (megacore)."""
    if r % 8 != 0:
        return r
    # per-row bytes: (x f32 + q bf16 + kv bf16) double-buffered + f32 temporaries
    per_row = 2 * (4 * h + 2 * h + 4 * h) + 4 * h + 12 * h
    cands = [t for t in range(8, min(r, 32768) + 1, 8)
             if r % t == 0 and t * per_row <= budget]
    if not cands:
        return 8
    two_step = [t for t in cands if r // t >= 2]
    return max(two_step) if two_step else max(cands)


def _n_tile(n, h, b, budget):
    """n-tile for the attention kernel.  Must be a multiple of 8 (or == n) so the
    (None, N, tn, H) blocks satisfy the (8, 128) second-minor constraint."""
    per_n = (2 * (2 * n * h + 4 * n * h + 4 * n * h)   # q + kv + out blocks, double-buffered
             + 4 * n * h                               # reordered kv (bf16, 2H wide)
             + 3 * 4 * n * n                           # bias / scores / probs (f32)
             + 2 * 4 * n * h)                          # f32 accumulators
    cands = [t for t in range(8, n, 8) if n % t == 0] + [n]
    fit = [t for t in cands if t * per_n <= budget] or [cands[0]]
    tn = max(fit)
    if b * (n // tn) < 2:                              # keep both TensorCores busy
        smaller = [t for t in fit if b * (n // t) >= 2]
        if smaller:
            tn = max(smaller)
    return tn


# ----------------------------------------------------------------------------
# Kernel 1: fused LayerNorm + single QKV projection (row-tiled, weight resident)
# ----------------------------------------------------------------------------
def ln_qkv_kernel(x_ref, gamma_ref, beta_ref, w_ref, q_ref, kv_ref):
    """x_ref: (tr, H) f32; w_ref: (H, 3H) bf16 (W_q columns pre-scaled by 1/sqrt(d));
    q_ref: (tr, H) bf16; kv_ref: (tr, 2H) bf16 packed [k | v]."""
    h = q_ref.shape[-1]
    x = x_ref[...].astype(jnp.float32)
    mu = jnp.mean(x, axis=-1, keepdims=True)
    var = jnp.mean(jnp.square(x - mu), axis=-1, keepdims=True)
    xn = (x - mu) * jax.lax.rsqrt(var + 1e-5)
    xn = (xn * gamma_ref[...] + beta_ref[...]).astype(w_ref.dtype)
    proj = jnp.dot(xn, w_ref[...], preferred_element_type=jnp.float32)  # (tr, 3H)
    q_ref[...] = proj[:, :h].astype(q_ref.dtype)
    kv_ref[...] = proj[:, h:].astype(kv_ref.dtype)


# ----------------------------------------------------------------------------
# Kernel 2: edge attention + fused output projection for one (batch, n-tile)
#   q_ref:    (tn, N, H)   bf16  [n, a, H]   (already scaled by 1/sqrt(d))
#   kv_ref:   (N, tn, 2H)  bf16  [c, n, k|v] (natural HBM order, no XLA transpose)
#   mask_ref: (N, N)       f32   [a, c]      (batch-0 mask, diagonal zeroed)
#   w_out_ref:(H, H)       bf16
#   o_ref:    (N, tn, H)   f32   [a, n, H]   -> final module output layout
# ----------------------------------------------------------------------------
def attention_kernel(mask_ref, q_ref, kv_ref, w_out_ref, o_ref, *, n_head):
    tn, n, hdim = q_ref.shape
    d = hdim // n_head
    n0 = pl.program_id(1) * tn

    # Additive bias built once per grid step (no O(N^3) HBM traffic, no per-head where).
    c_idx = jax.lax.broadcasted_iota(jnp.int32, (tn, n), 1)
    n_idx = jax.lax.broadcasted_iota(jnp.int32, (tn, n), 0) + n0
    diag_ok = c_idx != n_idx                                        # (tn, n) over (n, c)
    keep = (mask_ref[...] > 0.0)[None, :, :] & diag_ok[:, None, :]  # (tn, N_a, N_c)
    bias = jnp.where(keep, 0.0, _NEG_BIG)

    q = q_ref[...]                                  # [n, a, H]
    kv = _swap01(kv_ref[...])                       # [n, c, 2H]  (single on-chip reorder)
    w_out = w_out_ref[...]

    acc = jnp.zeros((tn * n, hdim), jnp.float32)    # projected output accumulator, [n*a, H]
    for hh in range(n_head):
        sl = slice(hh * d, (hh + 1) * d)
        s = jnp.einsum("nad,ncd->nac", q[:, :, sl], kv[:, :, sl],
                       preferred_element_type=jnp.float32) + bias
        m = jnp.max(s, axis=-1, keepdims=True)
        p = jnp.exp(s - m)
        p = p * pl.reciprocal(jnp.sum(p, axis=-1, keepdims=True), approx=True)
        o_h = jnp.einsum("nac,ncd->nad", p.astype(kv.dtype),
                         kv[:, :, hdim + hh * d: hdim + (hh + 1) * d],
                         preferred_element_type=jnp.float32)        # (tn, N, d)
        # Fused output projection: this head's contribution at full H lane width.
        acc += jnp.dot(o_h.reshape(tn * n, d).astype(w_out.dtype), w_out[sl, :],
                       preferred_element_type=jnp.float32)

    out = acc.reshape(tn, n, hdim)                  # [n, a, H]
    # Final on-chip reorder -> [a, n, H]; single lane-dense full-H store.
    o_ref[...] = _swap01(out).astype(o_ref.dtype)


# ----------------------------------------------------------------------------
# Wrapper: full SelfAttention.forward
# ----------------------------------------------------------------------------
def self_attention_forward(x, mask, params, n_head, compute_dtype=jnp.bfloat16):
    B, N, N2, H = x.shape
    assert N == N2
    d = H // n_head
    R = B * N * N
    f32 = jnp.float32

    cap = _vmem_capacity_bytes()
    vmem_limit = int(min(cap * 3 // 4, 100 * 1024 * 1024))
    tile_budget = vmem_limit // 2

    # Fold the 1/sqrt(d) score scaling into the W_q columns (one-time, free).
    w_in = params["w_in"].astype(f32)
    w_in = w_in.at[:, :H].multiply(1.0 / math.sqrt(d))
    w_in = w_in.astype(compute_dtype)                     # (H, 3H) == torch W^T
    w_out = params["w_out"].astype(compute_dtype)         # (H, H)
    gamma = params["gamma"].reshape(1, H).astype(f32)
    beta = params["beta"].reshape(1, H).astype(f32)

    # --- kernel 1: LayerNorm + fused QKV projection over row tiles ---
    tr = _row_tile(R, H, tile_budget)
    q2, kv2 = pl.pallas_call(
        ln_qkv_kernel,
        out_shape=(jax.ShapeDtypeStruct((R, H), compute_dtype),
                   jax.ShapeDtypeStruct((R, 2 * H), compute_dtype)),
        grid=(R // tr,),
        in_specs=[pl.BlockSpec((tr, H), lambda i: (i, 0)),
                  pl.BlockSpec((1, H), lambda i: (0, 0)),
                  pl.BlockSpec((1, H), lambda i: (0, 0)),
                  pl.BlockSpec((H, 3 * H), lambda i: (0, 0))],
        out_specs=(pl.BlockSpec((tr, H), lambda i: (i, 0)),
                   pl.BlockSpec((tr, 2 * H), lambda i: (i, 0))),
        compiler_params=pltpu.CompilerParams(
            dimension_semantics=("parallel",),
            vmem_limit_bytes=vmem_limit),
    )(x.reshape(R, H), gamma, beta, w_in)

    q4 = q2.reshape(B, N, N, H)          # [b, n, a, H]   (free reshape, no HBM pass)
    kv4 = kv2.reshape(B, N, N, 2 * H)    # [b, c, n, k|v] (free reshape, no HBM pass)

    # Mask from batch 0 only (mirrors torch's attn_mask[0] quirk), diagonal removed.
    eye = jnp.eye(N, dtype=bool)
    mask0 = jnp.where(eye, False, mask[0]).astype(f32)    # (N, N), 1.0 = attend

    # --- kernel 2: edge attention + fused output projection + final layout ---
    tn = _n_tile(N, H, B, tile_budget)
    out = pl.pallas_call(
        functools.partial(attention_kernel, n_head=n_head),
        out_shape=jax.ShapeDtypeStruct((B, N, N, H), f32),
        grid=(B, N // tn),
        in_specs=[pl.BlockSpec((N, N), lambda b, t: (0, 0)),
                  pl.BlockSpec((None, tn, N, H), lambda b, t: (b, t, 0, 0)),
                  pl.BlockSpec((None, N, tn, 2 * H), lambda b, t: (b, 0, t, 0)),
                  pl.BlockSpec((H, H), lambda b, t: (0, 0))],
        out_specs=pl.BlockSpec((None, N, tn, H), lambda b, t: (b, 0, t, 0)),
        compiler_params=pltpu.CompilerParams(
            dimension_semantics=("parallel", "parallel"),
            vmem_limit_bytes=vmem_limit),
    )(mask0, q4, kv4, w_out)
    return out  # already in [b, a, n, H] order == module output


# ----------------------------------------------------------------------------
# Pure-JAX f32 reference (mirrors the PyTorch code exactly)
# ----------------------------------------------------------------------------
def reference_forward(x, mask, params, n_head):
    B, N, _, H = x.shape
    d = H // n_head
    mu = x.mean(-1, keepdims=True)
    var = ((x - mu) ** 2).mean(-1, keepdims=True)
    xn = (x - mu) / jnp.sqrt(var + 1e-5) * params["gamma"] + params["beta"]
    proj = xn @ params["w_in"]
    q_c, k_c, v_c = jnp.split(proj, 3, axis=-1)
    q5 = q_c.reshape(B, N, N, n_head, d).transpose(0, 3, 1, 2, 4)
    k5 = k_c.reshape(B, N, N, n_head, d).transpose(0, 3, 2, 1, 4)
    v5 = v_c.reshape(B, N, N, n_head, d).transpose(0, 3, 2, 1, 4)
    eye = jnp.eye(N, dtype=bool)
    mz = mask & ~eye[None]
    am = mz[:, None, :, :] & (~eye)[None, :, None, :]
    bias = jnp.where(am[0], 0.0, -jnp.inf)
    s = jnp.einsum("bhnad,bhncd->bhnac", q5, k5) / math.sqrt(d) + bias
    p = jax.nn.softmax(s, axis=-1)
    ao = jnp.einsum("bhnac,bhncd->bhnad", p, v5)
    ao = ao.transpose(0, 2, 3, 1, 4).transpose(0, 2, 1, 3, 4)
    return ao.reshape(B, N, N, H) @ params["w_out"]


if __name__ == "__main__":
    B, N, H, n_head = 2, 8, 32, 4

    key = jax.random.PRNGKey(0)
    kx, kw1, kw2, kg, kb, km = jax.random.split(key, 6)

    x = jax.random.normal(kx, (B, N, N, H), dtype=jnp.float32)

    # Boolean adjacency-style mask; force a few columns True so no softmax row
    # is fully masked (would be NaN in torch too).
    mask = jax.random.bernoulli(km, 0.7, (B, N, N))
    mask = mask.at[:, :, 0:3].set(True)

    params = {
        "gamma": 1.0 + 0.1 * jax.random.normal(kg, (H,), dtype=jnp.float32),
        "beta": 0.1 * jax.random.normal(kb, (H,), dtype=jnp.float32),
        # torch Linear(H, 3H, bias=False).weight is (3H, H); we store W^T.
        "w_in": 0.1 * jax.random.normal(kw1, (H, 3 * H), dtype=jnp.float32),
        "w_out": 0.1 * jax.random.normal(kw2, (H, H), dtype=jnp.float32),
    }

    fwd = jax.jit(functools.partial(self_attention_forward, n_head=n_head))
    out = jax.block_until_ready(fwd(x, mask, params))

    ref = reference_forward(x, mask, params, n_head)
    assert out.shape == (B, N, N, H), out.shape
    err = float(jnp.max(jnp.abs(out - ref)))
    # bf16 MXU inputs + approx reciprocal vs an all-f32 reference.
    assert err < 5e-2, err

    print("KERNEL_OK")
</pallas_src>

<mosaic_0001>
module attributes {stable_mosaic.version = 11 : i64} {
  func.func @ln_qkv_kernel(%arg0: i32, %arg1: memref<64x32xf32, #tpu.memory_space<vmem>>, %arg2: memref<1x32xf32, #tpu.memory_space<vmem>>, %arg3: memref<1x32xf32, #tpu.memory_space<vmem>>, %arg4: memref<32x96xbf16, #tpu.memory_space<vmem>>, %arg5: memref<64x32xbf16, #tpu.memory_space<vmem>>, %arg6: memref<64x64xbf16, #tpu.memory_space<vmem>>) attributes {dimension_semantics = [#tpu.dimension_semantics<parallel>], iteration_bounds = array<i64: 2>, scalar_prefetch = 0 : i64, scratch_operands = 0 : i64, tpu.core_type = #tpu.core_type<tc>, window_params = [{transform_indices = @transform_0, window_bounds = array<i64: 64, 32>}, {pipeline_mode = #tpu.pipeline_mode<synchronous>, transform_indices = @transform_1, window_bounds = array<i64: 1, 32>}, {pipeline_mode = #tpu.pipeline_mode<synchronous>, transform_indices = @transform_2, window_bounds = array<i64: 1, 32>}, {pipeline_mode = #tpu.pipeline_mode<synchronous>, transform_indices = @transform_3, window_bounds = array<i64: 32, 96>}, {transform_indices = @transform_4, window_bounds = array<i64: 64, 32>}, {transform_indices = @transform_5, window_bounds = array<i64: 64, 64>}]} {
    %c0 = arith.constant 0 : index
    %c0_0 = arith.constant 0 : index
    %0 = vector.load %arg1[%c0, %c0_0] : memref<64x32xf32, #tpu.memory_space<vmem>>, vector<64x32xf32>
    %cst = arith.constant dense<0.000000e+00> : vector<64xf32>
    %1 = vector.multi_reduction <add>, %0, %cst [1] : vector<64x32xf32> to vector<64xf32>
    %2 = vector.shape_cast %1 : vector<64xf32> to vector<64x1xf32>
    %cst_1 = arith.constant 3.200000e+01 : f32
    %3 = vector.broadcast %cst_1 : f32 to vector<64x1xf32>
    %4 = arith.divf %2, %3 : vector<64x1xf32>
    %5 = vector.broadcast %4 : vector<64x1xf32> to vector<64x32xf32>
    %6 = arith.subf %0, %5 : vector<64x32xf32>
    %7 = arith.mulf %6, %6 : vector<64x32xf32>
    %cst_2 = arith.constant dense<0.000000e+00> : vector<64xf32>
    %8 = vector.multi_reduction <add>, %7, %cst_2 [1] : vector<64x32xf32> to vector<64xf32>
    %9 = vector.shape_cast %8 : vector<64xf32> to vector<64x1xf32>
    %cst_3 = arith.constant 3.200000e+01 : f32
    %10 = vector.broadcast %cst_3 : f32 to vector<64x1xf32>
    %11 = arith.divf %9, %10 : vector<64x1xf32>
    %12 = vector.broadcast %4 : vector<64x1xf32> to vector<64x32xf32>
    %13 = arith.subf %0, %12 : vector<64x32xf32>
    %cst_4 = arith.constant 9.99999974E-6 : f32
    %14 = vector.broadcast %cst_4 : f32 to vector<64x1xf32>
    %15 = arith.addf %11, %14 : vector<64x1xf32>
    %16 = math.rsqrt %15 : vector<64x1xf32>
    %17 = vector.broadcast %16 : vector<64x1xf32> to vector<64x32xf32>
    %18 = arith.mulf %13, %17 : vector<64x32xf32>
    %c0_5 = arith.constant 0 : index
    %c0_6 = arith.constant 0 : index
    %19 = vector.load %arg2[%c0_5, %c0_6] : memref<1x32xf32, #tpu.memory_space<vmem>>, vector<1x32xf32>
    %20 = vector.broadcast %19 : vector<1x32xf32> to vector<64x32xf32>
    %21 = arith.mulf %18, %20 : vector<64x32xf32>
    %c0_7 = arith.constant 0 : index
    %c0_8 = arith.constant 0 : index
    %22 = vector.load %arg3[%c0_7, %c0_8] : memref<1x32xf32, #tpu.memory_space<vmem>>, vector<1x32xf32>
    %23 = vector.broadcast %22 : vector<1x32xf32> to vector<64x32xf32>
    %24 = arith.addf %21, %23 : vector<64x32xf32>
    %25 = arith.truncf %24 : vector<64x32xf32> to vector<64x32xbf16>
    %c0_9 = arith.constant 0 : index
    %c0_10 = arith.constant 0 : index
    %26 = vector.load %arg4[%c0_9, %c0_10] : memref<32x96xbf16, #tpu.memory_space<vmem>>, vector<32x96xbf16>
    %cst_11 = arith.constant dense<0.000000e+00> : vector<64x96xf32>
    %27 = tpu.matmul %25, %26, %cst_11 {dimension_numbers = #tpu.dot_dimension_numbers<[1], [0], [0], [1], [0, 0, 1, 1], [], []>} : vector<64x32xbf16>, vector<32x96xbf16>, vector<64x96xf32> -> vector<64x96xf32>
    %28 = vector.extract_strided_slice %27 {offsets = [0, 0], sizes = [64, 32], strides = [1, 1]} : vector<64x96xf32> to vector<64x32xf32>
    %29 = arith.truncf %28 : vector<64x32xf32> to vector<64x32xbf16>
    %c0_12 = arith.constant 0 : index
    %c0_13 = arith.constant 0 : index
    %30 = vector.load %arg5[%c0_12, %c0_13] : memref<64x32xbf16, #tpu.memory_space<vmem>>, vector<64x32xbf16>
    tpu.vector_store %arg5[%c0_12, %c0_13], %29 {strides = array<i32>} : memref<64x32xbf16, #tpu.memory_space<vmem>>, vector<64x32xbf16>,
    %31 = vector.extract_strided_slice %27 {offsets = [0, 32], sizes = [64, 64], strides = [1, 1]} : vector<64x96xf32> to vector<64x64xf32>
    %32 = arith.truncf %31 : vector<64x64xf32> to vector<64x64xbf16>
    %c0_14 = arith.constant 0 : index
    %c0_15 = arith.constant 0 : index
    %33 = vector.load %arg6[%c0_14, %c0_15] : memref<64x64xbf16, #tpu.memory_space<vmem>>, vector<64x64xbf16>
    tpu.vector_store %arg6[%c0_14, %c0_15], %32 {strides = array<i32>} : memref<64x64xbf16, #tpu.memory_space<vmem>>, vector<64x64xbf16>,
    return
  }
  func.func @transform_0(%arg0: i32) -> (i32, i32) {
    %c0_i32 = arith.constant 0 : i32
    %c0_i32_0 = arith.constant 0 : i32
    return %arg0, %c0_i32 : i32, i32
  }
  func.func @transform_1(%arg0: i32) -> (i32, i32) {
    %c0_i32 = arith.constant 0 : i32
    %c0_i32_0 = arith.constant 0 : i32
    %c0_i32_1 = arith.constant 0 : i32
    return %c0_i32, %c0_i32_0 : i32, i32
  }
  func.func @transform_2(%arg0: i32) -> (i32, i32) {
    %c0_i32 = arith.constant 0 : i32
    %c0_i32_0 = arith.constant 0 : i32
    %c0_i32_1 = arith.constant 0 : i32
    return %c0_i32, %c0_i32_0 : i32, i32
  }
  func.func @transform_3(%arg0: i32) -> (i32, i32) {
    %c0_i32 = arith.constant 0 : i32
    %c0_i32_0 = arith.constant 0 : i32
    %c0_i32_1 = arith.constant 0 : i32
    return %c0_i32, %c0_i32_0 : i32, i32
  }
  func.func @transform_4(%arg0: i32) -> (i32, i32) {
    %c0_i32 = arith.constant 0 : i32
    %c0_i32_0 = arith.constant 0 : i32
    return %arg0, %c0_i32 : i32, i32
  }
  func.func @transform_5(%arg0: i32) -> (i32, i32) {
    %c0_i32 = arith.constant 0 : i32
    %c0_i32_0 = arith.constant 0 : i32
    return %arg0, %c0_i32 : i32, i32
  }
}

module attributes {stable_mosaic.version = 11 : i64} {
  func.func @attention_kernel(%arg0: i32, %arg1: i32, %arg2: memref<8x8xf32, #tpu.memory_space<vmem>>, %arg3: memref<1x8x8x32xbf16, #tpu.memory_space<vmem>>, %arg4: memref<1x8x8x64xbf16, #tpu.memory_space<vmem>>, %arg5: memref<32x32xbf16, #tpu.memory_space<vmem>>, %arg6: memref<1x8x8x32xf32, #tpu.memory_space<vmem>>) attributes {dimension_semantics = [#tpu.dimension_semantics<parallel>, #tpu.dimension_semantics<parallel>], iteration_bounds = array<i64: 2, 1>, scalar_prefetch = 0 : i64, scratch_operands = 0 : i64, tpu.core_type = #tpu.core_type<tc>, window_params = [{pipeline_mode = #tpu.pipeline_mode<synchronous>, transform_indices = @transform_0, window_bounds = array<i64: 8, 8>}, {transform_indices = @transform_1, window_bounds = array<i64: 1, 8, 8, 32>}, {transform_indices = @transform_2, window_bounds = array<i64: 1, 8, 8, 64>}, {pipeline_mode = #tpu.pipeline_mode<synchronous>, transform_indices = @transform_3, window_bounds = array<i64: 32, 32>}, {transform_indices = @transform_4, window_bounds = array<i64: 1, 8, 8, 32>}]} {
    %c8_i32 = arith.constant 8 : i32
    %0 = arith.muli %arg1, %c8_i32 : i32
    %1 = tpu.iota {dimensions = array<i32: 1>} : vector<8x8xi32>
    %2 = tpu.iota {dimensions = array<i32: 0>} : vector<8x8xi32>
    %3 = vector.broadcast %0 : i32 to vector<8x8xi32>
    %4 = arith.addi %2, %3 : vector<8x8xi32>
    %5 = arith.cmpi ne, %1, %4 : vector<8x8xi32>
    %c0 = arith.constant 0 : index
    %c0_0 = arith.constant 0 : index
    %6 = vector.load %arg2[%c0, %c0_0] : memref<8x8xf32, #tpu.memory_space<vmem>>, vector<8x8xf32>
    %cst = arith.constant 0.000000e+00 : f32
    %7 = vector.broadcast %cst : f32 to vector<8x8xf32>
    %8 = arith.cmpf ogt, %6, %7 : vector<8x8xf32>
    %9 = vector.shape_cast %8 : vector<8x8xi1> to vector<1x8x8xi1>
    %10 = vector.shape_cast %5 : vector<8x8xi1> to vector<8x1x8xi1>
    %11 = vector.broadcast %9 : vector<1x8x8xi1> to vector<8x8x8xi1>
    %12 = vector.broadcast %10 : vector<8x1x8xi1> to vector<8x8x8xi1>
    %13 = arith.andi %11, %12 : vector<8x8x8xi1>
    %cst_1 = arith.constant 0.000000e+00 : f32
    %cst_2 = arith.constant -1.000000e+30 : f32
    %14 = vector.broadcast %cst_1 : f32 to vector<8x8x8xf32>
    %15 = vector.broadcast %cst_2 : f32 to vector<8x8x8xf32>
    %16 = arith.select %13, %14, %15 : vector<8x8x8xi1>, vector<8x8x8xf32>
    %c0_3 = arith.constant 0 : index
    %c0_4 = arith.constant 0 : index
    %c0_5 = arith.constant 0 : index
    %c0_6 = arith.constant 0 : index
    %17 = vector.load %arg3[%c0_3, %c0_4, %c0_5, %c0_6] : memref<1x8x8x32xbf16, #tpu.memory_space<vmem>>, vector<1x8x8x32xbf16>
    %18 = vector.shape_cast %17 : vector<1x8x8x32xbf16> to vector<8x8x32xbf16>
    %c0_7 = arith.constant 0 : index
    %c0_8 = arith.constant 0 : index
    %c0_9 = arith.constant 0 : index
    %c0_10 = arith.constant 0 : index
    %19 = vector.load %arg4[%c0_7, %c0_8, %c0_9, %c0_10] : memref<1x8x8x64xbf16, #tpu.memory_space<vmem>>, vector<1x8x8x64xbf16>
    %20 = vector.shape_cast %19 : vector<1x8x8x64xbf16> to vector<8x8x64xbf16>
    %21 = tpu.transpose %20, [1, 0, 2] : vector<8x8x64xbf16> -> vector<8x8x64xbf16>
    %c0_11 = arith.constant 0 : index
    %c0_12 = arith.constant 0 : index
    %22 = vector.load %arg5[%c0_11, %c0_12] : memref<32x32xbf16, #tpu.memory_space<vmem>>, vector<32x32xbf16>
    %cst_13 = arith.constant 0.000000e+00 : f32
    %23 = vector.broadcast %cst_13 : f32 to vector<64x32xf32>
    %24 = vector.extract_strided_slice %18 {offsets = [0, 0, 0], sizes = [8, 8, 8], strides = [1, 1, 1]} : vector<8x8x32xbf16> to vector<8x8x8xbf16>
    %25 = vector.extract_strided_slice %21 {offsets = [0, 0, 0], sizes = [8, 8, 8], strides = [1, 1, 1]} : vector<8x8x64xbf16> to vector<8x8x8xbf16>
    "tpu.trace_start"() <{level = 10 : i32, message = "nad,ncd->nac"}> : () -> ()
    %cst_14 = arith.constant dense<0.000000e+00> : vector<8x8x8xf32>
    %26 = tpu.matmul %24, %25, %cst_14 {dimension_numbers = #tpu.dot_dimension_numbers<[2], [2], [1], [1], [0, 0, 0, 1, 1, 1], [0], [0]>} : vector<8x8x8xbf16>, vector<8x8x8xbf16>, vector<8x8x8xf32> -> vector<8x8x8xf32>
    "tpu.trace_stop"() : () -> ()
    %27 = arith.addf %26, %16 : vector<8x8x8xf32>
    %cst_15 = arith.constant dense<0xFF800000> : vector<8x8xf32>
    %28 = vector.multi_reduction <maximumf>, %27, %cst_15 [2] : vector<8x8x8xf32> to vector<8x8xf32>
    %29 = vector.shape_cast %28 : vector<8x8xf32> to vector<8x8x1xf32>
    %30 = vector.broadcast %29 : vector<8x8x1xf32> to vector<8x8x8xf32>
    %31 = arith.subf %27, %30 : vector<8x8x8xf32>
    %32 = math.exp %31 : vector<8x8x8xf32>
    %cst_16 = arith.constant dense<0.000000e+00> : vector<8x8xf32>
    %33 = vector.multi_reduction <add>, %32, %cst_16 [2] : vector<8x8x8xf32> to vector<8x8xf32>
    %34 = vector.shape_cast %33 : vector<8x8xf32> to vector<8x8x1xf32>
    %35 = tpu.reciprocal %34 {approx = true} : vector<8x8x1xf32> -> vector<8x8x1xf32>
    %36 = vector.broadcast %35 : vector<8x8x1xf32> to vector<8x8x8xf32>
    %37 = arith.mulf %32, %36 : vector<8x8x8xf32>
    %38 = arith.truncf %37 : vector<8x8x8xf32> to vector<8x8x8xbf16>
    %39 = vector.extract_strided_slice %21 {offsets = [0, 0, 32], sizes = [8, 8, 8], strides = [1, 1, 1]} : vector<8x8x64xbf16> to vector<8x8x8xbf16>
    "tpu.trace_start"() <{level = 10 : i32, message = "nac,ncd->nad"}> : () -> ()
    %cst_17 = arith.constant dense<0.000000e+00> : vector<8x8x8xf32>
    %40 = tpu.matmul %38, %39, %cst_17 {dimension_numbers = #tpu.dot_dimension_numbers<[2], [1], [1], [2], [0, 0, 0, 1, 1, 2], [0], [0]>} : vector<8x8x8xbf16>, vector<8x8x8xbf16>, vector<8x8x8xf32> -> vector<8x8x8xf32>
    "tpu.trace_stop"() : () -> ()
    %41 = vector.shape_cast %40 : vector<8x8x8xf32> to vector<64x8xf32>
    %42 = arith.truncf %41 : vector<64x8xf32> to vector<64x8xbf16>
    %43 = vector.extract_strided_slice %22 {offsets = [0, 0], sizes = [8, 32], strides = [1, 1]} : vector<32x32xbf16> to vector<8x32xbf16>
    %cst_18 = arith.constant dense<0.000000e+00> : vector<64x32xf32>
    %44 = tpu.matmul %42, %43, %cst_18 {dimension_numbers = #tpu.dot_dimension_numbers<[1], [0], [0], [1], [0, 0, 1, 1], [], []>} : vector<64x8xbf16>, vector<8x32xbf16>, vector<64x32xf32> -> vector<64x32xf32>
    %45 = arith.addf %23, %44 : vector<64x32xf32>
    %46 = vector.extract_strided_slice %18 {offsets = [0, 0, 8], sizes = [8, 8, 8], strides = [1, 1, 1]} : vector<8x8x32xbf16> to vector<8x8x8xbf16>
    %47 = vector.extract_strided_slice %21 {offsets = [0, 0, 8], sizes = [8, 8, 8], strides = [1, 1, 1]} : vector<8x8x64xbf16> to vector<8x8x8xbf16>
    "tpu.trace_start"() <{level = 10 : i32, message = "nad,ncd->nac"}> : () -> ()
    %cst_19 = arith.constant dense<0.000000e+00> : vector<8x8x8xf32>
    %48 = tpu.matmul %46, %47, %cst_19 {dimension_numbers = #tpu.dot_dimension_numbers<[2], [2], [1], [1], [0, 0, 0, 1, 1, 1], [0], [0]>} : vector<8x8x8xbf16>, vector<8x8x8xbf16>, vector<8x8x8xf32> -> vector<8x8x8xf32>
    "tpu.trace_stop"() : () -> ()
    %49 = arith.addf %48, %16 : vector<8x8x8xf32>
    %cst_20 = arith.constant dense<0xFF800000> : vector<8x8xf32>
    %50 = vector.multi_reduction <maximumf>, %49, %cst_20 [2] : vector<8x8x8xf32> to vector<8x8xf32>
    %51 = vector.shape_cast %50 : vector<8x8xf32> to vector<8x8x1xf32>
    %52 = vector.broadcast %51 : vector<8x8x1xf32> to vector<8x8x8xf32>
    %53 = arith.subf %49, %52 : vector<8x8x8xf32>
    %54 = math.exp %53 : vector<8x8x8xf32>
    %cst_21 = arith.constant dense<0.000000e+00> : vector<8x8xf32>
    %55 = vector.multi_reduction <add>, %54, %cst_21 [2] : vector<8x8x8xf32> to vector<8x8xf32>
    %56 = vector.shape_cast %55 : vector<8x8xf32> to vector<8x8x1xf32>
    %57 = tpu.reciprocal %56 {approx = true} : vector<8x8x1xf32> -> vector<8x8x1xf32>
    %58 = vector.broadcast %57 : vector<8x8x1xf32> to vector<8x8x8xf32>
    %59 = arith.mulf %54, %58 : vector<8x8x8xf32>
    %60 = arith.truncf %59 : vector<8x8x8xf32> to vector<8x8x8xbf16>
    %61 = vector.extract_strided_slice %21 {offsets = [0, 0, 40], sizes = [8, 8, 8], strides = [1, 1, 1]} : vector<8x8x64xbf16> to vector<8x8x8xbf16>
    "tpu.trace_start"() <{level = 10 : i32, message = "nac,ncd->nad"}> : () -> ()
    %cst_22 = arith.constant dense<0.000000e+00> : vector<8x8x8xf32>
    %62 = tpu.matmul %60, %61, %cst_22 {dimension_numbers = #tpu.dot_dimension_numbers<[2], [1], [1], [2], [0, 0, 0, 1, 1, 2], [0], [0]>} : vector<8x8x8xbf16>, vector<8x8x8xbf16>, vector<8x8x8xf32> -> vector<8x8x8xf32>
    "tpu.trace_stop"() : () -> ()
    %63 = vector.shape_cast %62 : vector<8x8x8xf32> to vector<64x8xf32>
    %64 = arith.truncf %63 : vector<64x8xf32> to vector<64x8xbf16>
    %65 = vector.extract_strided_slice %22 {offsets = [8, 0], sizes = [8, 32], strides = [1, 1]} : vector<32x32xbf16> to vector<8x32xbf16>
    %cst_23 = arith.constant dense<0.000000e+00> : vector<64x32xf32>
    %66 = tpu.matmul %64, %65, %cst_23 {dimension_numbers = #tpu.dot_dimension_numbers<[1], [0], [0], [1], [0, 0, 1, 1], [], []>} : vector<64x8xbf16>, vector<8x32xbf16>, vector<64x32xf32> -> vector<64x32xf32>
    %67 = arith.addf %45, %66 : vector<64x32xf32>
    %68 = vector.extract_strided_slice %18 {offsets = [0, 0, 16], sizes = [8, 8, 8], strides = [1, 1, 1]} : vector<8x8x32xbf16> to vector<8x8x8xbf16>
    %69 = vector.extract_strided_slice %21 {offsets = [0, 0, 16], sizes = [8, 8, 8], strides = [1, 1, 1]} : vector<8x8x64xbf16> to vector<8x8x8xbf16>
    "tpu.trace_start"() <{level = 10 : i32, message = "nad,ncd->nac"}> : () -> ()
    %cst_24 = arith.constant dense<0.000000e+00> : vector<8x8x8xf32>
    %70 = tpu.matmul %68, %69, %cst_24 {dimension_numbers = #tpu.dot_dimension_numbers<[2], [2], [1], [1], [0, 0, 0, 1, 1, 1], [0], [0]>} : vector<8x8x8xbf16>, vector<8x8x8xbf16>, vector<8x8x8xf32> -> vector<8x8x8xf32>
    "tpu.trace_stop"() : () -> ()
    %71 = arith.addf %70, %16 : vector<8x8x8xf32>
    %cst_25 = arith.constant dense<0xFF800000> : vector<8x8xf32>
    %72 = vector.multi_reduction <maximumf>, %71, %cst_25 [2] : vector<8x8x8xf32> to vector<8x8xf32>
    %73 = vector.shape_cast %72 : vector<8x8xf32> to vector<8x8x1xf32>
    %74 = vector.broadcast %73 : vector<8x8x1xf32> to vector<8x8x8xf32>
    %75 = arith.subf %71, %74 : vector<8x8x8xf32>
    %76 = math.exp %75 : vector<8x8x8xf32>
    %cst_26 = arith.constant dense<0.000000e+00> : vector<8x8xf32>
    %77 = vector.multi_reduction <add>, %76, %cst_26 [2] : vector<8x8x8xf32> to vector<8x8xf32>
    %78 = vector.shape_cast %77 : vector<8x8xf32> to vector<8x8x1xf32>
    %79 = tpu.reciprocal %78 {approx = true} : vector<8x8x1xf32> -> vector<8x8x1xf32>
    %80 = vector.broadcast %79 : vector<8x8x1xf32> to vector<8x8x8xf32>
    %81 = arith.mulf %76, %80 : vector<8x8x8xf32>
    %82 = arith.truncf %81 : vector<8x8x8xf32> to vector<8x8x8xbf16>
    %83 = vector.extract_strided_slice %21 {offsets = [0, 0, 48], sizes = [8, 8, 8], strides = [1, 1, 1]} : vector<8x8x64xbf16> to vector<8x8x8xbf16>
    "tpu.trace_start"() <{level = 10 : i32, message = "nac,ncd->nad"}> : () -> ()
    %cst_27 = arith.constant dense<0.000000e+00> : vector<8x8x8xf32>
    %84 = tpu.matmul %82, %83, %cst_27 {dimension_numbers = #tpu.dot_dimension_numbers<[2], [1], [1], [2], [0, 0, 0, 1, 1, 2], [0], [0]>} : vector<8x8x8xbf16>, vector<8x8x8xbf16>, vector<8x8x8xf32> -> vector<8x8x8xf32>
    "tpu.trace_stop"() : () -> ()
    %85 = vector.shape_cast %84 : vector<8x8x8xf32> to vector<64x8xf32>
    %86 = arith.truncf %85 : vector<64x8xf32> to vector<64x8xbf16>
    %87 = vector.extract_strided_slice %22 {offsets = [16, 0], sizes = [8, 32], strides = [1, 1]} : vector<32x32xbf16> to vector<8x32xbf16>
    %cst_28 = arith.constant dense<0.000000e+00> : vector<64x32xf32>
    %88 = tpu.matmul %86, %87, %cst_28 {dimension_numbers = #tpu.dot_dimension_numbers<[1], [0], [0], [1], [0, 0, 1, 1], [], []>} : vector<64x8xbf16>, vector<8x32xbf16>, vector<64x32xf32> -> vector<64x32xf32>
    %89 = arith.addf %67, %88 : vector<64x32xf32>
    %90 = vector.extract_strided_slice %18 {offsets = [0, 0, 24], sizes = [8, 8, 8], strides = [1, 1, 1]} : vector<8x8x32xbf16> to vector<8x8x8xbf16>
    %91 = vector.extract_strided_slice %21 {offsets = [0, 0, 24], sizes = [8, 8, 8], strides = [1, 1, 1]} : vector<8x8x64xbf16> to vector<8x8x8xbf16>
    "tpu.trace_start"() <{level = 10 : i32, message = "nad,ncd->nac"}> : () -> ()
    %cst_29 = arith.constant dense<0.000000e+00> : vector<8x8x8xf32>
    %92 = tpu.matmul %90, %91, %cst_29 {dimension_numbers = #tpu.dot_dimension_numbers<[2], [2], [1], [1], [0, 0, 0, 1, 1, 1], [0], [0]>} : vector<8x8x8xbf16>, vector<8x8x8xbf16>, vector<8x8x8xf32> -> vector<8x8x8xf32>
    "tpu.trace_stop"() : () -> ()
    %93 = arith.addf %92, %16 : vector<8x8x8xf32>
    %cst_30 = arith.constant dense<0xFF800000> : vector<8x8xf32>
    %94 = vector.multi_reduction <maximumf>, %93, %cst_30 [2] : vector<8x8x8xf32> to vector<8x8xf32>
    %95 = vector.shape_cast %94 : vector<8x8xf32> to vector<8x8x1xf32>
    %96 = vector.broadcast %95 : vector<8x8x1xf32> to vector<8x8x8xf32>
    %97 = arith.subf %93, %96 : vector<8x8x8xf32>
    %98 = math.exp %97 : vector<8x8x8xf32>
    %cst_31 = arith.constant dense<0.000000e+00> : vector<8x8xf32>
    %99 = vector.multi_reduction <add>, %98, %cst_31 [2] : vector<8x8x8xf32> to vector<8x8xf32>
    %100 = vector.shape_cast %99 : vector<8x8xf32> to vector<8x8x1xf32>
    %101 = tpu.reciprocal %100 {approx = true} : vector<8x8x1xf32> -> vector<8x8x1xf32>
    %102 = vector.broadcast %101 : vector<8x8x1xf32> to vector<8x8x8xf32>
    %103 = arith.mulf %98, %102 : vector<8x8x8xf32>
    %104 = arith.truncf %103 : vector<8x8x8xf32> to vector<8x8x8xbf16>
    %105 = vector.extract_strided_slice %21 {offsets = [0, 0, 56], sizes = [8, 8, 8], strides = [1, 1, 1]} : vector<8x8x64xbf16> to vector<8x8x8xbf16>
    "tpu.trace_start"() <{level = 10 : i32, message = "nac,ncd->nad"}> : () -> ()
    %cst_32 = arith.constant dense<0.000000e+00> : vector<8x8x8xf32>
    %106 = tpu.matmul %104, %105, %cst_32 {dimension_numbers = #tpu.dot_dimension_numbers<[2], [1], [1], [2], [0, 0, 0, 1, 1, 2], [0], [0]>} : vector<8x8x8xbf16>, vector<8x8x8xbf16>, vector<8x8x8xf32> -> vector<8x8x8xf32>
    "tpu.trace_stop"() : () -> ()
    %107 = vector.shape_cast %106 : vector<8x8x8xf32> to vector<64x8xf32>
    %108 = arith.truncf %107 : vector<64x8xf32> to vector<64x8xbf16>
    %109 = vector.extract_strided_slice %22 {offsets = [24, 0], sizes = [8, 32], strides = [1, 1]} : vector<32x32xbf16> to vector<8x32xbf16>
    %cst_33 = arith.constant dense<0.000000e+00> : vector<64x32xf32>
    %110 = tpu.matmul %108, %109, %cst_33 {dimension_numbers = #tpu.dot_dimension_numbers<[1], [0], [0], [1], [0, 0, 1, 1], [], []>} : vector<64x8xbf16>, vector<8x32xbf16>, vector<64x32xf32> -> vector<64x32xf32>
    %111 = arith.addf %89, %110 : vector<64x32xf32>
    %112 = vector.shape_cast %111 : vector<64x32xf32> to vector<8x8x32xf32>
    %113 = tpu.transpose %112, [1, 0, 2] : vector<8x8x32xf32> -> vector<8x8x32xf32>
    %c0_34 = arith.constant 0 : index
    %c0_35 = arith.constant 0 : index
    %c0_36 = arith.constant 0 : index
    %c0_37 = arith.constant 0 : index
    %114 = vector.load %arg6[%c0_34, %c0_35, %c0_36, %c0_37] : memref<1x8x8x32xf32, #tpu.memory_space<vmem>>, vector<1x8x8x32xf32>
    %115 = vector.shape_cast %114 : vector<1x8x8x32xf32> to vector<8x8x32xf32>
    %116 = vector.shape_cast %113 : vector<8x8x32xf32> to vector<1x8x8x32xf32>
    tpu.vector_store %arg6[%c0_34, %c0_35, %c0_36, %c0_37], %116 {strides = array<i32>} : memref<1x8x8x32xf32, #tpu.memory_space<vmem>>, vector<1x8x8x32xf32>,
    return
  }
  func.func @transform_0(%arg0: i32, %arg1: i32) -> (i32, i32) {
    %c0_i32 = arith.constant 0 : i32
    %c0_i32_0 = arith.constant 0 : i32
    %c0_i32_1 = arith.constant 0 : i32
    return %c0_i32, %c0_i32_0 : i32, i32
  }
  func.func @transform_1(%arg0: i32, %arg1: i32) -> (i32, i32, i32, i32) {
    %c0_i32 = arith.constant 0 : i32
    %c0_i32_0 = arith.constant 0 : i32
    %c0_i32_1 = arith.constant 0 : i32
    return %arg0, %arg1, %c0_i32, %c0_i32_0 : i32, i32, i32, i32
  }
  func.func @transform_2(%arg0: i32, %arg1: i32) -> (i32, i32, i32, i32) {
    %c0_i32 = arith.constant 0 : i32
    %c0_i32_0 = arith.constant 0 : i32
    %c0_i32_1 = arith.constant 0 : i32
    return %arg0, %c0_i32, %arg1, %c0_i32_0 : i32, i32, i32, i32
  }
  func.func @transform_3(%arg0: i32, %arg1: i32) -> (i32, i32) {
    %c0_i32 = arith.constant 0 : i32
    %c0_i32_0 = arith.constant 0 : i32
    %c0_i32_1 = arith.constant 0 : i32
    return %c0_i32, %c0_i32_0 : i32, i32
  }
  func.func @transform_4(%arg0: i32, %arg1: i32) -> (i32, i32, i32, i32) {
    %c0_i32 = arith.constant 0 : i32
    %c0_i32_0 = arith.constant 0 : i32
    %c0_i32_1 = arith.constant 0 : i32
    return %arg0, %c0_i32, %arg1, %c0_i32_0 : i32, i32, i32, i32
  }
}

</mosaic_0001>

<bundles_post_ra>
// kernel: self_attention_forward.2
= control target key start
LH: loop header
LB: loop body
LE: loop exit
PB: predicated region body
PF: predicated region fallthrough
CT: control target
= control target key end

     0   :  { %s771_s18 = smov 0   ;;  %s986_s0 = inlined_call_operand.vmem [shape: f32[128,32], index: 0, kind: input, shape index: {}]   ;;  %s987_s1 = inlined_call_operand.vmem [shape: f32[1,32], index: 1, kind: input, shape index: {}]   ;;  %s988_s2 = inlined_call_operand.vmem [shape: f32[1,32], index: 2, kind: input, shape index: {}]   ;;  %s989_s3 = inlined_call_operand.vmem [shape: bf16[32,96], index: 3, kind: input, shape index: {}]   ;;  %s990_s4 = inlined_call_operand.vmem [shape: bf16[128,32], index: 4, kind: output, shape index: {0}]   ;;  %s991_s5 = inlined_call_operand.vmem [shape: bf16[128,64], index: 5, kind: output, shape index: {1}]  }
   0x1 LB: > { %s668_s19 = sadd.s32 4294967295, %s737_s18   ;;  %p672_p0 = scmp.ge.s32.totalorder %s737_s18, 1  ;;  %s737_s18 = sphi %s771_s18, %s16_s18  }
   0x2   : > { %p191_p1 = scmp.lt.s32.totalorder %s737_s18, 3 }
   0x4   : > { %p192_p2 = pnand %p672_p0, %p191_p1 }
   0x5   : > { %s673_s20 = sshll.u32 (!%p192_p2), %s668_s19, 3  ;;  %s740_s12 = smov (!%p192_p2), 96  }
   0x6   : > { %195 = sbr.rel (%p192_p2) target bundleno = 562 (0x232), region = 36  ;;  %p225_p3 = scmp.lt.s32.totalorder (!%p192_p2), %s673_s20, 15 }
   0xb   : > { %s999_s20 = smov (!%p225_p3, %s673_s20), 15  ;;  %vm251_vm0 = vcmask 261120   ;;  %v739_v16 = vmov 32.0  }
   0xc   : > { %s674_s21 = sshll.u32 %s999_s20, 3  ;;  %713 = vrcp.f32 %v739_v16  ;;  %s676_s8 = sshll.u32 %s999_s20, 2 }
   0xd   : > { %s228_s24 = scalar_lea.vmem %s986_s0, %s674_s21  ;;  %s952_s11 = scalar_lea.vmem %s990_s4, %s676_s8 }
   0xe   : > { %v249_v0 = vld [vmem:[%s228_s24 + $0x30] sm:$0xff]  ;;  %v247_v1 = vld [vmem:[%s228_s24 + $0x20] sm:$0xff]  ;;  %v250_v6 = vld [vmem:[%s228_s24 + $0x38] sm:$0xff]  ;;  %s240_s15 = scalar_lea.vmem %s991_s5, %s676_s8 }
   0xf   : > { %v243_v2 = vld [vmem:[%s228_s24] sm:$0xff]  ;;  %v270_v3 = vsel %vm251_vm0, %v249_v0, 0.0  ;;  %v264_v4 = vsel %vm251_vm0, %v247_v1, 0.0  ;;  %v248_v7 = vld [vmem:[%s228_s24 + $0x28] sm:$0xff]  ;;  %v273_v9 = vsel %vm251_vm0, %v250_v6, 0.0  ;;  %v245_v12 = vld [vmem:[%s228_s24 + $0x10] sm:$0xff] }
  0x10   : > { %v252_v5 = vsel %vm251_vm0, %v243_v2, 0.0  ;;  %271 = vadd.xlane.f32.xlu1 %v270_v3  ;;  %265 = vadd.xlane.f32.xlu0 %v264_v4  ;;  %v244_v8 = vld [vmem:[%s228_s24 + $0x8] sm:$0xff]  ;;  %v267_v10 = vsel %vm251_vm0, %v248_v7, 0.0  ;;  %v246_v13 = vld [vmem:[%s228_s24 + $0x18] sm:$0xff]  ;;  %v258_v14 = vsel %vm251_vm0, %v245_v12, 0.0 }
  0x11   : > { %253 = vadd.xlane.f32.xlu2 %v252_v5  ;;  %v255_v11 = vsel %vm251_vm0, %v244_v8, 0.0  ;;  %v261_v15 = vsel %vm251_vm0, %v246_v13, 0.0  ;;  %v694_v3 = vld [vmem:[%s989_s3 + $0x8] sm:$0xff] }
  0x12   : > { %v714_v17 = vpop.eup %713  ;;  %696 = vmatpush.bf16.msra.mxu2 %v694_v3  ;;  %697 = vmatpush.bf16.msra.mxu3 %v694_v3 }
  0x13   : > { %v277_v18 = vmul.f32 32.0, %v714_v17  ;;  %vm281_vm1 = vweird.f32 %v714_v17  ;;  %497 = vmatpush.bf16.msra.mxu0 %v694_v3  ;;  %695 = vmatpush.bf16.msra.mxu1 %v694_v3 }
  0x15   : > { %v278_v19 = vsub.f32 1.0, %v277_v18 }
  0x17   : > { %v279_v20 = vmul.f32 %v714_v17, %v278_v19 }
  0x18   : > { %274 = vadd.xlane.f32.xlu1 %v273_v9  ;;  %268 = vadd.xlane.f32.xlu0 %v267_v10 }
  0x19   : > { %256 = vadd.xlane.f32.xlu2 %v255_v11  ;;  %v280_v21 = vadd.f32 %v714_v17, %v279_v20 }
  0x1b   : > { %v793_v22 = vsel %vm281_vm1, %v714_v17, %v280_v21 }
  0x20   : > { %259 = vadd.xlane.f32.xlu0 %v258_v14  ;;  %262 = vadd.xlane.f32.xlu1 %v261_v15 }
  0x83   : > { %v272_v23 = vpop.xlane.xlu1 %271  ;;  %v266_v24 = vpop.xlane.xlu0 %265 }
  0x84   : > { %v289_v25 = vmul.f32 %v793_v22, %v272_v23  ;;  %v287_v26 = vmul.f32 %v793_v22, %v266_v24  ;;  %v254_v27 = vpop.xlane.xlu2 %253 }
  0x85   : > { %v283_v40 = vmul.f32 %v793_v22, %v254_v27 }
  0x86   : > { %v797_v28 = vsub.f32 %v249_v0, %v289_v25  ;;  %v799_v29 = vsub.f32 %v247_v1, %v287_v26 }
  0x87   : > { %v823_v47 = vsub.f32 %v243_v2, %v283_v40 }
  0x88   : > { %v305_v30 = vmul.f32 %v797_v28, %v797_v28  ;;  %v303_v31 = vmul.f32 %v799_v29, %v799_v29 }
  0x89   : > { %v299_v56 = vmul.f32 %v823_v47, %v823_v47 }
  0x8a   : > { %v325_v32 = vsel %vm251_vm0, %v305_v30, 0.0  ;;  %v319_v33 = vsel %vm251_vm0, %v303_v31, 0.0 }
  0x8b   : > { %v275_v34 = vpop.xlane.xlu1 %274  ;;  %v269_v35 = vpop.xlane.xlu0 %268  ;;  %326 = vadd.xlane.f32.xlu1 %v325_v32  ;;  %320 = vadd.xlane.f32.xlu2 %v319_v33  ;;  %v307_v60 = vsel %vm251_vm0, %v299_v56, 0.0 }
  0x8c   : > { %v290_v36 = vmul.f32 %v793_v22, %v275_v34  ;;  %v288_v37 = vmul.f32 %v793_v22, %v269_v35  ;;  %v257_v38 = vpop.xlane.xlu2 %256 }
  0x8d   : > { %v284_v39 = vmul.f32 %v793_v22, %v257_v38 }
  0x8e   : > { %v811_v41 = vsub.f32 %v250_v6, %v290_v36  ;;  %v813_v42 = vsub.f32 %v248_v7, %v288_v37  ;;  %v693_v6 = vld [vmem:[%s989_s3] sm:$0xff] }
  0x8f   : > { %v815_v43 = vsub.f32 %v244_v8, %v284_v39  ;;  %699 = vmatpush.bf16.msra.mxu2 %v693_v6  ;;  %700 = vmatpush.bf16.msra.mxu3 %v693_v6 }
  0x90   : > { %v304_v44 = vmul.f32 %v813_v42, %v813_v42  ;;  %v306_v45 = vmul.f32 %v811_v41, %v811_v41  ;;  %498 = vmatpush.bf16.msra.mxu0 %v693_v6  ;;  %698 = vmatpush.bf16.msra.mxu1 %v693_v6 }
  0x91   : > { %v300_v46 = vmul.f32 %v815_v43, %v815_v43 }
  0x92   : > { %v322_v48 = vsel %vm251_vm0, %v304_v44, 0.0  ;;  %v328_v49 = vsel %vm251_vm0, %v306_v45, 0.0 }
  0x93   : > { %323 = vadd.xlane.f32.xlu0 %v322_v48  ;;  %v260_v50 = vpop.xlane.xlu0 %259  ;;  %329 = vadd.xlane.f32.xlu2 %v328_v49  ;;  %v310_v51 = vsel %vm251_vm0, %v300_v46, 0.0  ;;  %v263_v52 = vpop.xlane.xlu1 %262 }
  0x94   : > { %v285_v53 = vmul.f32 %v793_v22, %v260_v50  ;;  %311 = vadd.xlane.f32.xlu1 %v310_v51  ;;  %v286_v54 = vmul.f32 %v793_v22, %v263_v52 }
  0x96   : > { %v830_v55 = vsub.f32 %v245_v12, %v285_v53  ;;  %v834_v57 = vsub.f32 %v246_v13, %v286_v54 }
  0x98   : > { %v301_v58 = vmul.f32 %v830_v55, %v830_v55  ;;  %v302_v61 = vmul.f32 %v834_v57, %v834_v57 }
  0x9a   : > { %v313_v59 = vsel %vm251_vm0, %v301_v58, 0.0  ;;  %v316_v62 = vsel %vm251_vm0, %v302_v61, 0.0 }
  0x9b   : > { %314 = vadd.xlane.f32.xlu2 %v313_v59  ;;  %308 = vadd.xlane.f32.xlu0 %v307_v60 }
  0xa3   : > { %317 = vadd.xlane.f32.xlu0 %v316_v62 }
  0xfe   : > { %v327_v63 = vpop.xlane.xlu1 %326  ;;  %v321_v0 = vpop.xlane.xlu2 %320 }
  0xff   : > { %v337_v1 = vmul.f32 %v327_v63, %v793_v22  ;;  %v335_v2 = vmul.f32 %v321_v0, %v793_v22  ;;  %v900_v63 = vld [vmem:[%s987_s1] ss:$0 sm:$0xff] }
 0x101   : > { %v345_v4 = vadd.f32 1e-05, %v337_v1  ;;  %v343_v5 = vadd.f32 1e-05, %v335_v2 }
 0x103   : > { %715 = vrsqrt.f32 %v345_v4  ;;  %vm413_vm2 = vweird.f32 %v345_v4  ;;  %vm393_vm5 = vweird.f32 %v343_v5 }
 0x104   : > { %717 = vrsqrt.f32 %v343_v5 }
 0x106   : > { %v324_v7 = vpop.xlane.xlu0 %323  ;;  %v330_v8 = vpop.xlane.xlu2 %329 }
 0x107   : > { %v336_v9 = vmul.f32 %v324_v7, %v793_v22  ;;  %v312_v10 = vpop.xlane.xlu1 %311  ;;  %v338_v11 = vmul.f32 %v330_v8, %v793_v22 }
 0x108   : > { %v332_v12 = vmul.f32 %v312_v10, %v793_v22 }
 0x109   : > { %v716_v13 = vpop.eup %715  ;;  %v854_v14 = vadd.f32 1e-05, %v336_v9  ;;  %v856_v15 = vadd.f32 1e-05, %v338_v11  ;;  %v712_v11 = vld [vmem:[%s988_s2] ss:$0 sm:$0xff] }
 0x10a   : > { %v718_v16 = vpop.eup %717  ;;  %v408_v17 = vmul.f32 %v716_v13, %v345_v4  ;;  %v858_v18 = vadd.f32 1e-05, %v332_v12  ;;  %vm414_vm4 = vweird.f32 %v716_v13 }
 0x10b   : > { %v388_v19 = vmul.f32 %v718_v16, %v343_v5  ;;  %719 = vrsqrt.f32 %v854_v14  ;;  %vm394_vm3 = vweird.f32 %v718_v16  ;;  %vm403_vm7 = vweird.f32 %v854_v14  ;;  %vm886_vm8 = vmor %vm413_vm2, %vm414_vm4 }
 0x10c   : > { %v409_v20 = vmul.f32 %v716_v13, %v408_v17  ;;  %721 = vrsqrt.f32 %v858_v18  ;;  %vm875_vm6 = vmor %vm393_vm5, %vm394_vm3  ;;  %vm363_vm9 = vweird.f32 %v858_v18  ;;  %vm423_vm10 = vweird.f32 %v856_v15 }
 0x10d   : > { %v389_v21 = vmul.f32 %v718_v16, %v388_v19  ;;  %723 = vrsqrt.f32 %v856_v15 }
 0x10e   : > { %v410_v23 = vmul.f32 0.5, %v409_v20  ;;  %v309_v24 = vpop.xlane.xlu0 %308  ;;  %v315_v25 = vpop.xlane.xlu2 %314 }
 0x10f   : > { %v390_v26 = vmul.f32 0.5, %v389_v21  ;;  %v331_v27 = vmul.f32 %v309_v24, %v793_v22  ;;  %v333_v30 = vmul.f32 %v315_v25, %v793_v22 }
 0x110   : > { %v411_v31 = vsub.f32 1.5, %v410_v23 }
 0x111   : > { %v720_v32 = vpop.eup %719  ;;  %v391_v33 = vsub.f32 1.5, %v390_v26  ;;  %v865_v34 = vadd.f32 1e-05, %v331_v27  ;;  %v870_v37 = vadd.f32 1e-05, %v333_v30 }
 0x112   : > { %v867_v35 = vpop.eup %721  ;;  %v398_v36 = vmul.f32 %v720_v32, %v854_v14  ;;  %v412_v39 = vmul.f32 %v716_v13, %v411_v31  ;;  %vm404_vm11 = vweird.f32 %v720_v32 }
 0x113   : > { %v724_v38 = vpop.eup %723  ;;  %v392_v40 = vmul.f32 %v718_v16, %v391_v33  ;;  %v358_v44 = vmul.f32 %v867_v35, %v858_v18  ;;  %725 = vrsqrt.f32 %v865_v34  ;;  %vm364_vm12 = vweird.f32 %v867_v35  ;;  %vm405_vm14 = vmor %vm403_vm7, %vm404_vm11 }
 0x114   : > { %v399_v46 = vmul.f32 %v720_v32, %v398_v36  ;;  %v418_v48 = vmul.f32 %v724_v38, %v856_v15  ;;  %727 = vrsqrt.f32 %v870_v37  ;;  %v416_v56 = vsel %vm886_vm8, %v716_v13, %v412_v39  ;;  %vm910_vm15 = vmor %vm363_vm9, %vm364_vm12 }
 0x115   : > { %v396_v49 = vsel %vm875_vm6, %v718_v16, %v392_v40  ;;  %v359_v50 = vmul.f32 %v867_v35, %v358_v44  ;;  %vm424_vm13 = vweird.f32 %v724_v38  ;;  %v433_v3 = vmul.f32 %v416_v56, %v797_v28 }
 0x116   : > { %v400_v52 = vmul.f32 0.5, %v399_v46  ;;  %v419_v53 = vmul.f32 %v724_v38, %v418_v48  ;;  %v318_v54 = vpop.xlane.xlu0 %317  ;;  %v431_v60 = vmul.f32 %v396_v49, %v799_v29  ;;  %vm425_vm1 = vmor %vm423_vm10, %vm424_vm13  ;;  %vm353_vm2 = vweird.f32 %v865_v34 }
 0x117   : > { %v360_v58 = vmul.f32 0.5, %v359_v50  ;;  %v334_v59 = vmul.f32 %v318_v54, %v793_v22  ;;  %v445_v18 = vmul.f32 %v900_v63, %v433_v3  ;;  %vm373_vm4 = vweird.f32 %v870_v37 }
 0x118   : > { %v401_v61 = vsub.f32 1.5, %v400_v52  ;;  %v420_v62 = vmul.f32 0.5, %v419_v53  ;;  %v443_v10 = vmul.f32 %v900_v63, %v431_v60  ;;  %vm528_vm11 = vcmask 257024  }
 0x119   : > { %v726_v0 = vpop.eup %725  ;;  %v361_v1 = vsub.f32 1.5, %v360_v58  ;;  %v342_v2 = vadd.f32 1e-05, %v334_v59 }
 0x11a   : > { %v402_v4 = vmul.f32 %v720_v32, %v401_v61  ;;  %v421_v22 = vsub.f32 1.5, %v420_v62  ;;  %v348_v29 = vmul.f32 %v726_v0, %v865_v34  ;;  %v728_v6 = vpop.eup %727  ;;  %vm354_vm3 = vweird.f32 %v726_v0 }
 0x11b   : > { %v362_v5 = vmul.f32 %v867_v35, %v361_v1  ;;  %729 = vrsqrt.f32 %v342_v2  ;;  %v368_v13 = vmul.f32 %v728_v6, %v870_v37  ;;  %v455_v15 = vadd.f32 %v712_v11, %v443_v10  ;;  %vm355_vm5 = vmor %vm353_vm2, %vm354_vm3 }
 0x11c   : > { %v406_v7 = vsel %vm405_vm14, %v720_v32, %v402_v4  ;;  %v422_v9 = vmul.f32 %v724_v38, %v421_v22  ;;  %v349_v28 = vmul.f32 %v726_v0, %v348_v29  ;;  %vm374_vm6 = vweird.f32 %v728_v6 }
 0x11d   : > { %v432_v12 = vmul.f32 %v406_v7, %v813_v42  ;;  %v366_v14 = vsel %vm910_vm15, %v867_v35, %v362_v5  ;;  %v369_v20 = vmul.f32 %v728_v6, %v368_v13  ;;  %vm375_vm7 = vmor %vm373_vm4, %vm374_vm6  ;;  %vm383_vm9 = vweird.f32 %v342_v2 }
 0x11e   : > { %v426_v16 = vsel %vm425_vm1, %v724_v38, %v422_v9  ;;  %v350_v17 = vmul.f32 0.5, %v349_v28  ;;  %v428_v24 = vmul.f32 %v366_v14, %v815_v43 }
 0x11f   : > { %v434_v19 = vmul.f32 %v426_v16, %v811_v41  ;;  %v444_v21 = vmul.f32 %v900_v63, %v432_v12  ;;  %v370_v25 = vmul.f32 0.5, %v369_v20  ;;  %v457_v41 = vadd.f32 %v712_v11, %v445_v18 }
 0x120   : > { %v351_v42 = vsub.f32 1.5, %v350_v17  ;;  %v440_v40 = vmul.f32 %v900_v63, %v428_v24 }
 0x121   : > { %v730_v23 = vpop.eup %729  ;;  %v456_v26 = vadd.f32 %v712_v11, %v444_v21  ;;  %v446_v27 = vmul.f32 %v900_v63, %v434_v19  ;;  %v371_v32 = vsub.f32 1.5, %v370_v25 }
 0x122   : > { %v352_v30 = vmul.f32 %v726_v0, %v351_v42  ;;  %v378_v31 = vmul.f32 %v730_v23, %v342_v2  ;;  %vm384_vm8 = vweird.f32 %v730_v23  ;;  %v452_v50 = vadd.f32 %v712_v11, %v440_v40 }
 0x123   : > { %v461_v33 = vpack.c.bf16 %v456_v26, %v455_v15  ;;  %v458_v35 = vadd.f32 %v712_v11, %v446_v27  ;;  %v372_v39 = vmul.f32 %v728_v6, %v371_v32  ;;  %vm385_vm10 = vmor %vm383_vm9, %vm384_vm8 }
 0x124   : > { %v356_v34 = vsel %vm355_vm5, %v726_v0, %v352_v30  ;;  %v379_v36 = vmul.f32 %v730_v23, %v378_v31 }
 0x125   : > { %v427_v38 = vmul.f32 %v356_v34, %v823_v47  ;;  %689 = vmatmul.msk.bf16.vlgmr.msra.gmra.mxu2 %vm251_vm0, %v461_v33  ;;  %v462_v43 = vpack.c.bf16 %v458_v35, %v457_v41  ;;  %v376_v45 = vsel %vm375_vm7, %v728_v6, %v372_v39 }
 0x126   : > { %v380_v44 = vmul.f32 0.5, %v379_v36  ;;  %v429_v49 = vmul.f32 %v376_v45, %v830_v55 }
 0x127   : > { %690 = vmatmul.msk.bf16.vlgmr.msra.gmra.mxu3 %vm251_vm0, %v462_v43  ;;  %v439_v46 = vmul.f32 %v900_v63, %v427_v38 }
 0x128   : > { %v381_v48 = vsub.f32 1.5, %v380_v44  ;;  %v441_v54 = vmul.f32 %v900_v63, %v429_v49 }
 0x129   : > { %v451_v47 = vadd.f32 %v712_v11, %v439_v46 }
 0x12a   : > { %v382_v51 = vmul.f32 %v730_v23, %v381_v48  ;;  %v453_v58 = vadd.f32 %v712_v11, %v441_v54 }
 0x12b   : > { %v459_v52 = vpack.c.bf16 %v452_v50, %v451_v47 }
 0x12c   : > { %v386_v37 = vsel %vm385_vm10, %v730_v23, %v382_v51 }
 0x12d   : > { %v430_v53 = vmul.f32 %v386_v37, %v834_v57  ;;  %687 = vmatmul.msk.bf16.vlgmr.msra.gmra.mxu0 %vm251_vm0, %v459_v52 }
 0x12f   : > { %v442_v56 = vmul.f32 %v900_v63, %v430_v53 }
 0x131   : > { %v454_v59 = vadd.f32 %v712_v11, %v442_v56 }
 0x133   : > { %v460_v55 = vpack.c.bf16 %v454_v59, %v453_v58 }
 0x135   : > { %688 = vmatmul.msk.bf16.vlgmr.msra.gmra.mxu1 %vm251_vm0, %v460_v55  ;;  %vm569_vm0 = vcmask 519168  }
 0x1a8   : > { %v510_v57 = vpop.f32.mrf.mxu2 }
 0x1a9   : > { %v524_v60 = vpack.c.bf16 %v510_v57, %v510_v57 }
 0x1aa   : > { %v515_v61 = vpop.f32.mrf.mxu3  ;;  %v500_v62 = vpop.f32.mrf.mxu0 }
 0x1ab   : > { %533 = vst.msk [vmem:[%s952_s11 + $0x10] sm:$0xf] %vm528_vm11, %v524_v60  ;;  %v526_v63 = vpack.c.bf16 %v515_v61, %v515_v61  ;;  %v520_v0 = vpack.c.bf16 %v500_v62, %v500_v62 }
 0x1ad   : > { %535 = vst.msk [vmem:[%s952_s11 + $0x18] sm:$0xf] %vm528_vm11, %v526_v63  ;;  %545 = vrot.lane.b32.xlu1 %v520_v0, %s740_s12 }
 0x1ae   : > { %529 = vst.msk [vmem:[%s952_s11] sm:$0xf] %vm528_vm11, %v520_v0 }
 0x1b0   : > { %v512_v1 = vpop.f32.mrf.mxu2 }
 0x1b1   : > { %v525_v2 = vpack.c.bf16 %v512_v1, %v512_v1 }
 0x1b2   : > { %v517_v3 = vpop.f32.mrf.mxu3  ;;  %v502_v4 = vpop.f32.mrf.mxu0 }
 0x1b3   : > { %534 = vst.msk [vmem:[%s952_s11 + $0x14] sm:$0xf] %vm528_vm11, %v525_v2  ;;  %v527_v22 = vpack.c.bf16 %v517_v3, %v517_v3  ;;  %v521_v29 = vpack.c.bf16 %v502_v4, %v502_v4  ;;  %v505_v5 = vpop.f32.mrf.mxu1 }
 0x1b4   : > { %v522_v6 = vpack.c.bf16 %v505_v5, %v505_v5 }
 0x1b5   : > { %536 = vst.msk [vmem:[%s952_s11 + $0x1c] sm:$0xf] %vm528_vm11, %v527_v22  ;;  %547 = vrot.lane.b32.xlu2 %v521_v29, %s740_s12  ;;  %553 = vrot.lane.b32.xlu1 %v524_v60, %s740_s12 }
 0x1b6   : > { %530 = vst.msk [vmem:[%s952_s11 + $0x4] sm:$0xf] %vm528_vm11, %v521_v29  ;;  %549 = vrot.lane.b32.xlu0 %v522_v6, %s740_s12 }
 0x1b7   : > { %531 = vst.msk [vmem:[%s952_s11 + $0x8] sm:$0xf] %vm528_vm11, %v522_v6 }
 0x1bb   : > { %v507_v7 = vpop.f32.mrf.mxu1 }
 0x1bc   : > { %v523_v8 = vpack.c.bf16 %v507_v7, %v507_v7 }
 0x1bd   : > { %559 = vrot.lane.b32.xlu1 %v527_v22, %s740_s12 }
 0x1be   : > { %532 = vst.msk [vmem:[%s952_s11 + $0xc] sm:$0xf] %vm528_vm11, %v523_v8  ;;  %555 = vrot.lane.b32.xlu0 %v525_v2, %s740_s12  ;;  %551 = vrot.lane.b32.xlu2 %v523_v8, %s740_s12 }
 0x1c6   : > { %557 = vrot.lane.b32.xlu2 %v526_v63, %s740_s12 }
 0x20f   : > { %v548_v9 = vpop.permute.xlu2 %547 }
 0x210   : > { %571 = vst.msk [vmem:[%s240_s15 + $0x4] sm:$0xf] %vm569_vm0, %v548_v9 }
 0x218   : > { %v552_v28 = vpop.permute.xlu2 %551 }
 0x219   : > { %573 = vst.msk [vmem:[%s240_s15 + $0xc] sm:$0xf] %vm569_vm0, %v552_v28 }
 0x21f   : > { %v546_v10 = vpop.permute.xlu1 %545 }
 0x220   : > { %570 = vst.msk [vmem:[%s240_s15] sm:$0xf] %vm569_vm0, %v546_v10  ;;  %v558_v11 = vpop.permute.xlu2 %557 }
 0x221   : > { %576 = vst.msk [vmem:[%s240_s15 + $0x18] sm:$0xf] %vm569_vm0, %v558_v11 }
 0x227   : > { %v554_v12 = vpop.permute.xlu1 %553 }
 0x228   : > { %574 = vst.msk [vmem:[%s240_s15 + $0x10] sm:$0xf] %vm569_vm0, %v554_v12  ;;  %v550_v13 = vpop.permute.xlu0 %549 }
 0x229   : > { %572 = vst.msk [vmem:[%s240_s15 + $0x8] sm:$0xf] %vm569_vm0, %v550_v13 }
 0x22f   : > { %v560_v14 = vpop.permute.xlu1 %559 }
 0x230   : > { %577 = vst.msk [vmem:[%s240_s15 + $0x1c] sm:$0xf] %vm569_vm0, %v560_v14  ;;  %v556_v16 = vpop.permute.xlu0 %555 }
 0x231   : > { %575 = vst.msk [vmem:[%s240_s15 + $0x14] sm:$0xf] %vm569_vm0, %v556_v16 }
 0x232 PF: > { %s16_s18 = sadd.s32 1, %s737_s18  }
 0x233   : > { %p13_p4 = scmp.ge.s32.totalorder %s16_s18, 4  }
 0x235   :  { %15 = sbr.rel (!%p13_p4) target bundleno = 1 (0x1), region = 78 }

// kernel: self_attention_forward.3
= control target key start
LH: loop header
LB: loop body
LE: loop exit
PB: predicated region body
PF: predicated region fallthrough
CT: control target
= control target key end

     0   :  { %9 = vsyncpa [#allocation3], 0  ;;  %s4265_s0 = inlined_call_operand.vmem [shape: f32[8,8], index: 0, kind: input, shape index: {}]   ;;  %s4266_s1 = inlined_call_operand.vmem [shape: bf16[2,8,8,32], index: 1, kind: input, shape index: {}]   ;;  %s4267_s2 = inlined_call_operand.vmem [shape: bf16[2,8,8,64], index: 2, kind: input, shape index: {}]   ;;  %s4268_s3 = inlined_call_operand.vmem [shape: bf16[32,32], index: 3, kind: input, shape index: {}]   ;;  %s4269_s4 = inlined_call_operand.hbm [shape: f32[2,8,8,32], index: 4, kind: output, shape index: {}]  }
   0x1   :  { %11 = vsyncpa [#allocation3 + $0x1], 0  ;;  %s3082_s15 = smov 0   ;;  %s3084_s16 = smov 0  }
   0x2   :  { %s3086_s17 = smov 0   ;;  %s3088_s18 = smov 0  }
   0x3   :  { %s3090_s19 = smov 0   ;;  %s3092_s20 = smov 0  }
   0x4 LB: > { %s2670_s21 = sadd.s32 4294967295, %s3042_s20   ;;  %s2671_s22 = sadd.s32 4294967294, %s3042_s20   ;;  %s3042_s20 = sphi %s3092_s20, %s17_s20   ;;  %s3038_s19 = sphi %s3090_s19, %s4280_s19   ;;  %s3034_s18 = sphi %s3088_s18, %s4279_s18   ;;  %s3030_s17 = sphi %s3086_s17, %s4278_s17   ;;  %s3026_s16 = sphi %s3084_s16, %s4277_s16   ;;  %s3022_s15 = sphi %s3082_s15, %s4276_s15  }
   0x5   : > { %s29_s23 = sadd.s32 1, %s3038_s19  ;;  %s136_s24 = sadd.s32 1, %s3030_s17 }
   0x6   : > { %p31_p0 = scmp.ge.s32.totalorder %s29_s23, 2  ;;  %p146_p1 = scmp.ne.s32.totalorder %s3030_s17, %s3026_s16 }
   0x7   : > { %p147_p2 = scmp.eq.s32.totalorder %s2670_s21, 1  ;;  %p152_p3 = scmp.ne.s32.totalorder %s3026_s16, %s3022_s15 }
   0x8   : > { %s4282_s23 = smov (%p31_p0, %s29_s23), 0  ;;  %p153_p5 = scmp.eq.s32.totalorder %s2671_s22, 1 }
   0x9   : > { %p3122_p4 = por %p147_p2, %p146_p1  ;;  %s131_s26 = ssub.s32 %s3038_s19, %s4282_s23 }
   0xa   : > { %p2674_p6 = scmp.ge.s32.totalorder %s3042_s20, 1  ;;  %p134_p7 = scmp.eq.s32.totalorder %s131_s26, 0 }
   0xb   : > { %p3129_p8 = por %p153_p5, %p152_p3  ;;  %p201_p9 = scmp.lt.s32.totalorder %s3042_s20, 3 }
   0xc   : > { %s3135_s28 = scalar_select %p134_p7, %s3030_s17, %s136_s24  }
   0xd   : > { %p202_p10 = pnand %p2674_p6, %p201_p9 }
   0xe   : > { %p240_p11 = scmp.lt.s32.totalorder (!%p202_p10), %s3034_s18, 1  ;;  %s3048_s13 = smov (!%p202_p10), 96  }
   0xf   : > { %205 = sbr.rel (%p202_p10) target bundleno = 2253 (0x8cd), region = 36  ;;  %s3049_s14 = smov (!%p202_p10), 120  }
  0x10   : > { %s3050_s21 = smov (!%p202_p10), 88   ;;  %s3051_s22 = smov (!%p202_p10), 112  }
  0x11   : > { %s3052_s24 = smov (!%p202_p10), 80   ;;  %s3053_s26 = smov (!%p202_p10), 104  }
  0x12   : > { %s236_s12 = sand.u32 (!%p202_p10), 1, %s3026_s16   ;;  %s2984_s9 = scalar_lea.hbm (!%p202_p10), %s4269_s4, 128 }
  0x14   : > { %s3139_s29 = scalar_select %p240_p11, %s3034_s18, 1  ;;  %v3044_v0 = vmov 1983009808   ;;  %vm341_vm0 = vcmask 1047556   ;;  %v3045_v14 = vmov 1934713408  }
  0x15   : > { %v344_v1 = vunpack.c.l.s4 %v3044_v0  ;;  %v358_v15 = vunpack.c.l.s4 %v3045_v14  ;;  %vm425_vm1 = vcmask 64512  }
  0x16   : > { %s2765_s30 = sshll.u32 %s3139_s29, 5 }
  0x17   : > { %s256_s7 = scalar_lea.vmem %s4267_s2, %s2765_s30  ;;  %v3147_v11 = vunpack.c.0.s8 %v344_v1  ;;  %v3157_v25 = vunpack.c.0.s8 %v358_v15  ;;  %s3200_s10 = scalar_lea.vmem %s4266_s1, %s2765_s30 }
  0x18   : > { %v332_v2 = vld [vmem:[%s256_s7] sm:$0xf]  ;;  %v333_v3 = vld [vmem:[%s256_s7 + $0x4] sm:$0xf]  ;;  %v334_v4 = vld [vmem:[%s256_s7 + $0x8] sm:$0xf] }
  0x19   : > { %v335_v5 = vld [vmem:[%s256_s7 + $0xc] sm:$0xf]  ;;  %v336_v6 = vld [vmem:[%s256_s7 + $0x10] sm:$0xf]  ;;  %v337_v7 = vld [vmem:[%s256_s7 + $0x14] sm:$0xf] }
  0x1a   : > { %v338_v8 = vld [vmem:[%s256_s7 + $0x18] sm:$0xf]  ;;  %v339_v9 = vld [vmem:[%s256_s7 + $0x1c] sm:$0xf]  ;;  %v340_v10 = vrot.slane %v336_v6, 4  ;;  %v369_v12 = vrot.slane %v337_v7, 4 }
  0x1b   : > { %v347_v13 = vrot.slane %v338_v8, 4  ;;  %v375_v16 = vrot.slane %v339_v9, 4  ;;  %v3213_v59 = vld [vmem:[%s3200_s10] sm:$0xf]  ;;  %v3222_v62 = vld [vmem:[%s3200_s10 + $0x8] sm:$0xf] }
  0x1c   : > { %v342_v17 = vsel %vm341_vm0, %v340_v10, %v332_v2  ;;  %v370_v18 = vsel %vm341_vm0, %v369_v12, %v333_v3  ;;  %v3227_v0 = vld [vmem:[%s3200_s10 + $0xc] sm:$0xf]  ;;  %v3234_v1 = vld [vmem:[%s3200_s10 + $0x10] sm:$0xf]  ;;  %v3237_v2 = vld [vmem:[%s3200_s10 + $0x1c] sm:$0xf] }
  0x1d   : > { %v346_v19 = vperm.slane %v342_v17, %v3147_v11  ;;  %v348_v20 = vsel %vm341_vm0, %v347_v13, %v334_v4  ;;  %v374_v21 = vperm.slane %v370_v18, %v3147_v11  ;;  %v376_v22 = vsel %vm341_vm0, %v375_v16, %v335_v5  ;;  %v3244_v3 = vld [vmem:[%s3200_s10 + $0x18] sm:$0xf]  ;;  %v3256_v12 = vld [vmem:[%s4265_s0] sm:$0xff]  ;;  %s3054_s7 = smov 72   ;;  %s2558_s30 = scalar_lea.sflag [#allocation3], %s236_s12 }
  0x1e   : > { %v352_v23 = vperm.slane %v348_v20, %v3147_v11  ;;  %v380_v24 = vperm.slane %v376_v22, %v3147_v11  ;;  %v259_v4 = vlaneseq  ;;  %v3046_v7 = vmov 0  }
  0x1f   : > { %v355_v26 = vrot.slane %v346_v19, 4  ;;  %v383_v27 = vrot.slane %v374_v21, 4  ;;  %vm267_vm4 = vcmp.gt.f32.partialorder %v3256_v12, 0.0  ;;  %v3047_v17 = vmov -1e+30  }
  0x20   : > { %v353_v28 = vrot.slane %v352_v23, 4  ;;  %v381_v29 = vrot.slane %v380_v24, 4  ;;  %v260_v5 = vand.u32 127, %v259_v4  ;;  %v262_v6 = vshrl.u32 %v259_v4, 7 }
  0x21   : > { %v356_v30 = vsel %vm341_vm0, %v352_v23, %v355_v26  ;;  %v384_v31 = vsel %vm341_vm0, %v380_v24, %v383_v27 }
  0x22   : > { %v354_v32 = vsel %vm341_vm0, %v353_v28, %v346_v19  ;;  %v382_v33 = vsel %vm341_vm0, %v381_v29, %v374_v21  ;;  %v3164_v34 = vperm.slane %v356_v30, %v3157_v25  ;;  %v3167_v35 = vperm.slane %v384_v31, %v3157_v25 }
  0x23   : > { %v3170_v36 = vperm.slane %v354_v32, %v3157_v25  ;;  %v3173_v37 = vperm.slane %v382_v33, %v3157_v25  ;;  %vm265_vm2 = vcmp.ne.s32.totalorder %v260_v5, %v262_v6 }
  0x24   : > { %v367_v38 = vrot.slane %v3164_v34, 4  ;;  %v395_v39 = vrot.slane %v3167_v35, 4  ;;  %v3185_v43 = vpack.i.b16 %v3167_v35, %v3164_v34  ;;  %v3249_v8 = vsel %vm265_vm2, 1, %v3046_v7 }
  0x25   : > { %v3179_v40 = vpack.i.b16 %v3173_v37, %v3170_v36  ;;  %v365_v41 = vrot.slane %v3170_v36, 4  ;;  %v393_v42 = vrot.slane %v3173_v37, 4  ;;  %v270_v9 = vrot.slane %v3249_v8, 2 }
  0x26   : > { %v368_v44 = vsel %vm341_vm0, 0, %v367_v38  ;;  %v396_v45 = vsel %vm341_vm0, 0, %v395_v39  ;;  %v506_v52 = vsel %vm425_vm1, %v3185_v43, 0  ;;  %v292_v10 = vperm.slane %v3249_v8, 0 }
  0x27   : > { %v430_v46 = vsel %vm425_vm1, %v3179_v40, 0  ;;  %v366_v47 = vsel %vm341_vm0, 0, %v365_v41  ;;  %v394_v48 = vsel %vm341_vm0, 0, %v393_v42  ;;  %v418_v53 = vshrl.u32 %v368_v44, 16 }
  0x28   : > { %439 = vmatpush.bf16.xpose.msra.mxu1 %v430_v46  ;;  %v3193_v49 = vpack.i.b16 %v394_v48, %v366_v47  ;;  %v406_v50 = vshrl.u32 %v366_v47, 16  ;;  %v407_v51 = vshrl.u32 %v394_v48, 16  ;;  %v419_v54 = vshrl.u32 %v396_v45, 16 }
  0x29   : > { %v3215_v60 = vpack.i.b16 %v396_v45, %v368_v44  ;;  %v271_v13 = vrot.slane %v3249_v8, 3  ;;  %vm277_vm3 = vcmp.ne.s32.totalorder %v270_v9, 0  ;;  %vm300_vm5 = vcmp.eq.s32.totalorder %v292_v10, 1 }
  0x2a   : > { %v468_v55 = vsel %vm425_vm1, %v3193_v49, 0  ;;  %v3206_v56 = vpack.i.b16 %v407_v51, %v406_v50  ;;  %v3208_v57 = vpack.i.b16 %v419_v54, %v418_v53  ;;  %v286_v14 = vsel %vm277_vm3, 1, %v3046_v7  ;;  %vm308_vm7 = vmand %vm267_vm4, %vm300_vm5 }
  0x2b   : > { %477 = vmatpush.bf16.xpose.msra.mxu2 %v468_v55  ;;  %v544_v63 = vsel %vm425_vm1, %v3215_v60, 0  ;;  %vm278_vm6 = vcmp.ne.s32.totalorder %v271_v13, 0  ;;  %v294_v16 = vperm.slane %v286_v14, 0  ;;  %v3265_v18 = vsel %vm308_vm7, 0.0, %v3047_v17 }
  0x2c   : > { %v487_v58 = vsel %vm425_vm1, %v3206_v56, 0  ;;  %v563_v61 = vsel %vm425_vm1, %v3208_v57, 0  ;;  %v287_v15 = vsel %vm278_vm6, 1, %v3046_v7  ;;  %v275_v23 = vrot.slane %v3249_v8, 7 }
  0x2d   : > { %496 = vmatpush.bf16.xpose.msra.mxu3 %v487_v58  ;;  %v295_v19 = vperm.slane %v287_v15, 0  ;;  %vm302_vm8 = vcmp.eq.s32.totalorder %v294_v16, 1  ;;  %v400_v38 = vshrl.u32 %v3170_v36, 16  ;;  %v401_v39 = vshrl.u32 %v3173_v37, 16  ;;  %v3304_v36 = vld [vmem:[%s3200_s10 + $0x4] sm:$0xf] }
  0x2e   : > { %vm310_vm10 = vmand %vm267_vm4, %vm302_vm8  ;;  %vm282_vm12 = vcmp.ne.s32.totalorder %v275_v23, 0  ;;  %v274_v48 = vrot.slane %v3249_v8, 6  ;;  %v744_v37 = vunpack.c.l.b16 %v3206_v56  ;;  %v412_v56 = vshrl.u32 %v3164_v34, 16 }
  0x2f   : > { %2680 = vmatmul.msk.bf16.vlgmr.msra.gmra.mxu1 %vm425_vm1, %v3213_v59  ;;  %vm303_vm9 = vcmp.eq.s32.totalorder %v295_v19, 1  ;;  %v3278_v24 = vsel %vm310_vm10, 0.0, %v3047_v17  ;;  %v291_v33 = vsel %vm282_vm12, 1, %v3046_v7  ;;  %v3296_v44 = vpack.i.b16 %v401_v39, %v400_v38 }
  0x30   : > { %vm311_vm11 = vmand %vm267_vm4, %vm303_vm9  ;;  %v299_v42 = vperm.slane %v291_v33, 0  ;;  %vm281_vm15 = vcmp.ne.s32.totalorder %v274_v48, 0  ;;  %v3316_v55 = vpack.c.b16 %v744_v37, %v744_v37  ;;  %v721_v15 = vunpack.c.l.b16 %v3193_v49 }
  0x31   : > { %v3281_v28 = vsel %vm311_vm11, 0.0, %v3047_v17  ;;  %v449_v46 = vsel %vm425_vm1, %v3296_v44, 0  ;;  %v674_v23 = vunpack.c.l.b16 %v3179_v40  ;;  %v836_v48 = vunpack.c.l.b16 %v3208_v57 }
  0x32   : > { %2682 = vmatmul.msk.bf16.vlgmr.msra.gmra.mxu2 %vm425_vm1, %v3222_v62  ;;  %458 = vmatpush.bf16.xpose.msrb.mxu1 %v449_v46  ;;  %vm307_vm13 = vcmp.eq.s32.totalorder %v299_v42, 1  ;;  %v3343_v19 = vpack.c.b16 %v721_v15, %v721_v15  ;;  %vm681_vm5 = vcmask 1043456  }
  0x33   : > { %515 = vmatpush.bf16.xpose.msrb.mxu2 %v506_v52  ;;  %vm315_vm14 = vmand %vm267_vm4, %vm307_vm13  ;;  %v290_v52 = vsel %vm281_vm15, 1, %v3046_v7 }
  0x34   : > { %2683 = vmatmul.msk.bf16.vlgmr.msra.gmra.mxu3 %vm425_vm1, %v3227_v0  ;;  %v3310_v51 = vsel %vm315_vm14, 0.0, %v3047_v17  ;;  %v298_v58 = vperm.slane %v290_v52, 0  ;;  %v3373_v52 = vpack.c.b16 %v836_v48, %v836_v48 }
  0x35   : > { %572 = vmatpush.bf16.xpose.msrb.mxu3 %v563_v61 }
  0x36   : > { %vm306_vm2 = vcmp.eq.s32.totalorder %v298_v58, 1 }
  0x37   : > { %vm314_vm3 = vmand %vm267_vm4, %vm306_vm2 }
  0x38   : > { %v3330_v34 = vsel %vm314_vm3, 0.0, %v3047_v17 }
  0x3b   : > { %553 = vmatpush.bf16.xpose.msra.mxu2 %v544_v63  ;;  %v413_v63 = vshrl.u32 %v3167_v35, 16  ;;  %v3333_v35 = vld [vmem:[%s3200_s10 + $0x14] sm:$0xf] }
  0x3d   : > { %v3321_v5 = vpack.i.b16 %v413_v63, %v412_v56  ;;  %v916_v56 = vunpack.c.l.b16 %v3222_v62  ;;  %v1046_v62 = vunpack.c.l.b16 %v3237_v2 }
  0x3f   : > { %2681 = vmatmul.msk.bf16.vlgmr.msrb.gmra.mxu1 %vm425_vm1, %v3304_v36  ;;  %v525_v9 = vsel %vm425_vm1, %v3321_v5, 0  ;;  %v3399_v15 = vpack.c.b16 %v1046_v62, %v1046_v62 }
  0x40   : > { %534 = vmatpush.bf16.xpose.msra.mxu1 %v525_v9 }
  0x42   : > { %2684 = vmatmul.msk.bf16.vlgmr.msrb.gmra.mxu2 %vm425_vm1, %v3234_v1 }
  0x44   : > { %2687 = vmatmul.msk.bf16.vlgmr.msrb.gmra.mxu3 %vm425_vm1, %v3237_v2 }
  0x4f   : > { %2685 = vmatmul.msk.bf16.vlgmr.msra.gmra.mxu1 %vm425_vm1, %v3333_v35 }
  0x52   : > { %2686 = vmatmul.msk.bf16.vlgmr.msra.gmra.mxu2 %vm425_vm1, %v3244_v3 }
  0xac   : > { %v441_v20 = vpop.f32.mrf.mxu1 }
  0xad   : > { %v3268_v21 = vadd.f32 %v441_v20, %v3265_v18  ;;  %v813_v20 = vunpack.c.l.b16 %v3215_v60 }
  0xaf   : > { %v578_v22 = vsel %vm425_vm1, %v3268_v21, -inf }
  0xb0   : > { %579 = vmax.xlane.f32.xlu0 %v578_v22  ;;  %v3348_v22 = vpack.c.b16 %v813_v20, %v813_v20 }
  0xb4   : > { %v443_v26 = vpop.f32.mrf.mxu1 }
  0xb5   : > { %v479_v27 = vpop.f32.mrf.mxu2  ;;  %v3353_v26 = vpack.c.b16 %v674_v23, %v674_v23 }
  0xb6   : > { %v3284_v29 = vadd.f32 %v479_v27, %v3278_v24 }
  0xb7   : > { %v498_v30 = vpop.f32.mrf.mxu3 }
  0xb8   : > { %v3287_v31 = vadd.f32 %v498_v30, %v3281_v28  ;;  %v584_v32 = vsel %vm425_vm1, %v3284_v29, -inf }
  0xb9   : > { %585 = vmax.xlane.f32.xlu0 %v584_v32 }
  0xba   : > { %v587_v41 = vsel %vm425_vm1, %v3287_v31, -inf }
  0xbb   : > { %588 = vmax.xlane.f32.xlu1 %v587_v41 }
  0xbc   : > { %v3377_v58 = vpop.f32.mrf.mxu1 }
  0xbd   : > { %v481_v45 = vpop.f32.mrf.mxu2 }
  0xbf   : > { %v500_v47 = vpop.f32.mrf.mxu3 }
  0xc4   : > { %v462_v63 = vpop.f32.mrf.mxu1 }
  0xc5   : > { %v3307_v50 = vpop.f32.mrf.mxu2 }
  0xc7   : > { %v574_v53 = vpop.f32.mrf.mxu3 }
  0xc8   : > { %v575_v54 = vadd.f32 %v574_v53, %v3310_v51 }
  0xca   : > { %v599_v61 = vsel %vm425_vm1, %v575_v54, -inf }
  0xcb   : > { %600 = vmax.xlane.f32.xlu2 %v599_v61 }
  0xcc   : > { %v536_v20 = vpop.f32.mrf.mxu1 }
  0xcd   : > { %v519_v4 = vpop.f32.mrf.mxu2  ;;  %746 = vrot.lane.b32.xlu0 %v3316_v55, %s3048_s13 }
  0xce   : > { %v3387_v4 = vpack.c.b16 %v916_v56, %v916_v56 }
  0xcf   : > { %v576_v6 = vpop.f32.mrf.mxu3 }
  0xd0   : > { %v942_v6 = vunpack.c.l.b16 %v3227_v0 }
  0xd2   : > { %v3394_v9 = vpack.c.b16 %v942_v6, %v942_v6  ;;  %v269_v6 = vrot.slane %v3249_v8, 1 }
  0xd4   : > { %v538_v2 = vpop.f32.mrf.mxu1  ;;  %vm276_vm12 = vcmp.ne.s32.totalorder %v269_v6, 0 }
  0xd5   : > { %v555_v10 = vpop.f32.mrf.mxu2 }
  0xd6   : > { %v3336_v13 = vadd.f32 %v555_v10, %v3330_v34 }
  0xd8   : > { %v596_v14 = vsel %vm425_vm1, %v3336_v13, -inf }
  0xd9   : > { %597 = vmax.xlane.f32.xlu1 %v596_v14 }
  0xdd   : > { %v557_v16 = vpop.f32.mrf.mxu2 }
  0xe3   : > { %723 = vrot.lane.b32.xlu2 %v3343_v19, %s3048_s13 }
  0xeb   : > { %815 = vrot.lane.b32.xlu2 %v3348_v22, %s3048_s13 }
  0xf2   : > { %676 = vrot.lane.b32.xlu1 %v3353_v26, %s3048_s13 }
 0x123   : > { %v580_v49 = vpop.xlane.xlu0 %579 }
 0x124   : > { %v602_v27 = vsub.f32 %v3268_v21, %v580_v49 }
 0x126   : > { %v610_v30 = vmul.f32 1.442695, %v602_v27 }
 0x128   : > { %2836 = vpow2.f32 %v610_v30 }
 0x12c   : > { %v586_v60 = vpop.xlane.xlu0 %585 }
 0x12d   : > { %v604_v32 = vsub.f32 %v3284_v29, %v586_v60 }
 0x12e   : > { %v3359_v33 = vpop.eup %2836  ;;  %v589_v38 = vpop.xlane.xlu1 %588 }
 0x12f   : > { %v614_v40 = vmul.f32 1.442695, %v604_v32  ;;  %v605_v39 = vsub.f32 %v3287_v31, %v589_v38  ;;  %v626_v41 = vsel %vm425_vm1, %v3359_v33, 0.0  ;;  %v272_v32 = vrot.slane %v3249_v8, 4 }
 0x130   : > { %627 = vadd.xlane.f32.xlu2 %v626_v41  ;;  %v273_v38 = vrot.slane %v3249_v8, 5 }
 0x131   : > { %2838 = vpow2.f32 %v614_v40  ;;  %v616_v42 = vmul.f32 1.442695, %v605_v39  ;;  %vm279_vm6 = vcmp.ne.s32.totalorder %v272_v32, 0 }
 0x132   : > { %vm280_vm7 = vcmp.ne.s32.totalorder %v273_v38, 0  ;;  %v288_v40 = vsel %vm279_vm6, 1, %v3046_v7 }
 0x133   : > { %2840 = vpow2.f32 %v616_v42  ;;  %v289_v39 = vsel %vm280_vm7, 1, %v3046_v7  ;;  %v296_v42 = vperm.slane %v288_v40, 0 }
 0x135   : > { %vm304_vm8 = vcmp.eq.s32.totalorder %v296_v42, 1 }
 0x136   : > { %vm312_vm10 = vmand %vm267_vm4, %vm304_vm8 }
 0x137   : > { %v3364_v45 = vpop.eup %2838 }
 0x138   : > { %v632_v21 = vsel %vm425_vm1, %v3364_v45, 0.0 }
 0x139   : > { %633 = vadd.xlane.f32.xlu0 %v632_v21  ;;  %v3368_v29 = vpop.eup %2840  ;;  %v297_v21 = vperm.slane %v289_v39, 0 }
 0x13a   : > { %v635_v31 = vsel %vm425_vm1, %v3368_v29, 0.0 }
 0x13b   : > { %vm305_vm9 = vcmp.eq.s32.totalorder %v297_v21, 1 }
 0x13c   : > { %vm313_vm11 = vmand %vm267_vm4, %vm305_vm9 }
 0x13e   : > { %v601_v46 = vpop.xlane.xlu2 %600 }
 0x13f   : > { %v609_v47 = vsub.f32 %v575_v54, %v601_v46  ;;  %v747_v23 = vpop.permute.xlu0 %746 }
 0x140   : > { %v752_v49 = vsel %vm681_vm5, %v747_v23, 0 }
 0x141   : > { %v624_v37 = vmul.f32 1.442695, %v609_v47  ;;  %636 = vadd.xlane.f32.xlu0 %v635_v31  ;;  %v3425_v47 = vsel %vm313_vm11, 0.0, %v3047_v17 }
 0x142   : > { %v3432_v31 = vadd.f32 %v536_v20, %v3425_v47 }
 0x143   : > { %2842 = vpow2.f32 %v624_v37 }
 0x146   : > { %v724_v53 = vpop.permute.xlu2 %723 }
 0x147   : > { %v729_v54 = vsel %vm681_vm5, %v724_v53, 0  ;;  %v593_v53 = vsel %vm425_vm1, %v3432_v31, -inf }
 0x148   : > { %838 = vrot.lane.b32.xlu2 %v3373_v52, %s3048_s13  ;;  %738 = vmatpush.bf16.msrb.mxu2 %v729_v54  ;;  %v1020_v54 = vunpack.c.l.b16 %v3244_v3 }
 0x149   : > { %v3379_v61 = vpop.eup %2842 }
 0x14a   : > { %v647_v57 = vsel %vm425_vm1, %v3379_v61, 0.0 }
 0x14b   : > { %648 = vadd.xlane.f32.xlu1 %v647_v57  ;;  %v3441_v57 = vpack.c.b16 %v1020_v54, %v1020_v54 }
 0x14c   : > { %v598_v10 = vpop.xlane.xlu1 %597 }
 0x14d   : > { %v608_v30 = vsub.f32 %v3336_v13, %v598_v10  ;;  %v3422_v13 = vsel %vm312_vm10, 0.0, %v3047_v17 }
 0x14e   : > { %v816_v14 = vpop.permute.xlu2 %815  ;;  %v3429_v48 = vadd.f32 %v3307_v50, %v3422_v13  ;;  %v698_v50 = vunpack.c.l.b16 %v3296_v44  ;;  %v285_v44 = vsel %vm276_vm12, 1, %v3046_v7 }
 0x14f   : > { %v821_v16 = vsel %vm681_vm5, %v816_v14, 0  ;;  %v622_v60 = vmul.f32 1.442695, %v608_v30  ;;  %v293_v8 = vperm.slane %v285_v44, 0  ;;  %v790_v44 = vunpack.c.l.b16 %v3321_v5 }
 0x150   : > { %920 = vrot.lane.b32.xlu2 %v3343_v19, %s3049_s14  ;;  %830 = vmatpush.bf16.msra.mxu2 %v821_v16  ;;  %v590_v37 = vsel %vm425_vm1, %v3429_v48, -inf  ;;  %v3446_v56 = vpack.c.b16 %v698_v50, %v698_v50 }
 0x151   : > { %2844 = vpow2.f32 %v622_v60  ;;  %vm301_vm13 = vcmp.eq.s32.totalorder %v293_v8, 1 }
 0x152   : > { %vm309_vm14 = vmand %vm267_vm4, %vm301_vm13 }
 0x153   : > { %v3464_v32 = vsel %vm309_vm14, 0.0, %v3047_v17 }
 0x154   : > { %v461_v39 = vadd.f32 %v3377_v58, %v3464_v32 }
 0x155   : > { %918 = vrot.lane.b32.xlu0 %v3387_v4, %s3049_s14 }
 0x156   : > { %v581_v42 = vsel %vm425_vm1, %v461_v39, -inf }
 0x157   : > { %v3413_v41 = vpop.eup %2844 }
 0x158   : > { %946 = vrot.lane.b32.xlu2 %v3316_v55, %s3049_s14  ;;  %v644_v46 = vsel %vm425_vm1, %v3413_v41, 0.0 }
 0x160   : > { %944 = vrot.lane.b32.xlu2 %v3394_v9, %s3049_s14 }
 0x164   : > { %1048 = vrot.lane.b32.xlu1 %v3399_v15, %s3049_s14  ;;  %v677_v0 = vpop.permute.xlu1 %676 }
 0x165   : > { %v683_v27 = vsel %vm681_vm5, %v677_v0, 0 }
 0x166   : > { %692 = vmatpush.bf16.msra.mxu3 %v683_v27 }
 0x168   : > { %1050 = vrot.lane.b32.xlu2 %v3373_v52, %s3049_s14 }
 0x16a   : > { %761 = vmatpush.bf16.msrb.mxu3 %v752_v49 }
 0x17f   : > { %645 = vadd.xlane.f32.xlu0 %v644_v46 }
 0x18e   : > { %591 = vmax.xlane.f32.xlu1 %v590_v37 }
 0x191   : > { %594 = vmax.xlane.f32.xlu2 %v593_v53 }
 0x193   : > { %1024 = vrot.lane.b32.xlu0 %v3348_v22, %s3049_s14 }
 0x19b   : > { %1022 = vrot.lane.b32.xlu0 %v3441_v57, %s3049_s14 }
 0x1a3   : > { %v628_v63 = vpop.xlane.xlu2 %627 }
 0x1a4   : > { %2846 = vrcp.f32 %v628_v63 }
 0x1a7   : > { %894 = vrot.lane.b32.xlu1 %v3446_v56, %s3049_s14 }
 0x1aa   : > { %v2847_v10 = vpop.eup %2846 }
 0x1ab   : > { %v658_v62 = vmul.f32 %v2847_v10, %v3359_v33  ;;  %v839_v3 = vpop.permute.xlu2 %838 }
 0x1ac   : > { %v634_v14 = vpop.xlane.xlu0 %633  ;;  %v844_v20 = vsel %vm681_vm5, %v839_v3, 0 }
 0x1ad   : > { %v666_v16 = vpack.c.bf16 %v658_v62, %v658_v62  ;;  %2848 = vrcp.f32 %v634_v14 }
 0x1af   : > { %2688 = vmatmul.msk.bf16.vlgmr.msra.gmra.mxu3 %vm425_vm1, %v666_v16  ;;  %868 = vrot.lane.b32.xlu1 %v3353_v26, %s3049_s14 }
 0x1b0   : > { %853 = vmatpush.bf16.msra.mxu3 %v844_v20 }
 0x1b3   : > { %v2849_v23 = vpop.eup %2848  ;;  %v921_v0 = vpop.permute.xlu2 %920 }
 0x1b4   : > { %v660_v33 = vmul.f32 %v2849_v23, %v3364_v45  ;;  %v637_v49 = vpop.xlane.xlu0 %636  ;;  %v926_v2 = vsel %vm425_vm1, %v921_v0, 0  ;;  %v767_v23 = vunpack.c.l.b16 %v3185_v43  ;;  %v890_v0 = vunpack.c.l.b16 %v3304_v36 }
 0x1b5   : > { %2850 = vrcp.f32 %v637_v49 }
 0x1b6   : > { %v668_v27 = vpack.c.bf16 %v660_v33, %v660_v33  ;;  %v3494_v8 = vpack.c.b16 %v767_v23, %v767_v23  ;;  %v3501_v49 = vpack.c.b16 %v890_v0, %v890_v0 }
 0x1b7   : > { %1230 = vrot.lane.b32.xlu1 %v3316_v55, %s3050_s21 }
 0x1b8   : > { %2690 = vmatmul.msk.bf16.vlgmr.msrb.gmra.mxu2 %vm425_vm1, %v668_v27 }
 0x1b9   : > { %935 = vmatpush.bf16.xpose.msrb.mxu2 %v926_v2 }
 0x1bb   : > { %v2851_v30 = vpop.eup %2850  ;;  %v947_v7 = vpop.permute.xlu2 %946 }
 0x1bc   : > { %v661_v60 = vmul.f32 %v2851_v30, %v3368_v29  ;;  %v952_v40 = vsel %vm425_vm1, %v947_v7, 0  ;;  %v994_v7 = vunpack.c.l.b16 %v3333_v35 }
 0x1be   : > { %v669_v45 = vpack.c.bf16 %v661_v60, %v661_v60  ;;  %v649_v38 = vpop.xlane.xlu1 %648 }
 0x1bf   : > { %2852 = vrcp.f32 %v649_v38 }
 0x1c0   : > { %2691 = vmatmul.msk.bf16.vlgmr.msrb.gmra.mxu3 %vm425_vm1, %v669_v45 }
 0x1c1   : > { %961 = vmatpush.bf16.xpose.msrb.mxu3 %v952_v40 }
 0x1c3   : > { %v945_v12 = vpop.permute.xlu2 %944 }
 0x1c5   : > { %582 = vmax.xlane.f32.xlu0 %v581_v42  ;;  %v2853_v21 = vpop.eup %2852 }
 0x1c6   : > { %v665_v29 = vmul.f32 %v2853_v21, %v3379_v61 }
 0x1c7   : > { %v919_v58 = vpop.permute.xlu0 %918 }
 0x1c8   : > { %v673_v46 = vpack.c.bf16 %v665_v29, %v665_v29 }
 0x1cb   : > { %v1051_v17 = vpop.permute.xlu2 %1050 }
 0x1cc   : > { %v1056_v37 = vsel %vm425_vm1, %v1051_v17, 0 }
 0x1d0   : > { %2695 = vmatmul.msk.bf16.vlgmr.msra.gmra.mxu3 %vm425_vm1, %v673_v46 }
 0x1d1   : > { %1065 = vmatpush.bf16.xpose.msra.mxu3 %v1056_v37 }
 0x1d6   : > { %v1049_v53 = vpop.permute.xlu1 %1048 }
 0x1e0   : > { %2699 = vmatmul.msk.bf16.vlgmr.msrb.gmra.mxu3 %vm425_vm1, %v945_v12 }
 0x1f0   : > { %2703 = vmatmul.msk.bf16.vlgmr.msra.gmra.mxu3 %vm425_vm1, %v1049_v53 }
 0x1f2   : > { %v646_v54 = vpop.xlane.xlu0 %645 }
 0x1f3   : > { %2854 = vrcp.f32 %v646_v54 }
 0x1f9   : > { %v2855_v61 = vpop.eup %2854 }
 0x1fa   : > { %v664_v50 = vmul.f32 %v2855_v61, %v3413_v41 }
 0x1fc   : > { %v672_v63 = vpack.c.bf16 %v664_v50, %v664_v50 }
 0x1fe   : > { %2694 = vmatmul.msk.bf16.vlgmr.msra.gmra.mxu2 %vm425_vm1, %v672_v63 }
 0x201   : > { %v592_v17 = vpop.xlane.xlu1 %591 }
 0x202   : > { %v606_v46 = vsub.f32 %v3429_v48, %v592_v17 }
 0x204   : > { %v595_v6 = vpop.xlane.xlu2 %594  ;;  %v618_v53 = vmul.f32 1.442695, %v606_v46 }
 0x205   : > { %v607_v10 = vsub.f32 %v3432_v31, %v595_v6  ;;  %v1025_v62 = vpop.permute.xlu0 %1024  ;;  %v3489_v31 = vpack.c.b16 %v790_v44, %v790_v44 }
 0x206   : > { %v1030_v3 = vsel %vm425_vm1, %v1025_v62, 0 }
 0x207   : > { %v620_v14 = vmul.f32 1.442695, %v607_v10  ;;  %1039 = vmatpush.bf16.xpose.msra.mxu2 %v1030_v3 }
 0x209   : > { %2856 = vpow2.f32 %v620_v14 }
 0x20d   : > { %v1023_v41 = vpop.permute.xlu0 %1022 }
 0x20e   : > { %2698 = vmatmul.msk.bf16.vlgmr.msrb.gmra.mxu2 %vm425_vm1, %v919_v58 }
 0x20f   : > { %v3483_v16 = vpop.eup %2856 }
 0x210   : > { %v641_v20 = vsel %vm425_vm1, %v3483_v16, 0.0 }
 0x211   : > { %642 = vadd.xlane.f32.xlu2 %v641_v20 }
 0x219   : > { %v895_v46 = vpop.permute.xlu1 %894 }
 0x21e   : > { %2702 = vmatmul.msk.bf16.vlgmr.msra.gmra.mxu2 %vm425_vm1, %v1023_v41  ;;  %v864_v41 = vunpack.c.l.b16 %v3213_v59  ;;  %v968_v59 = vunpack.c.l.b16 %v3234_v1 }
 0x220   : > { %v3555_v0 = vpack.c.b16 %v864_v41, %v864_v41 }
 0x229   : > { %792 = vrot.lane.b32.xlu2 %v3489_v31, %s3048_s13 }
 0x231   : > { %769 = vrot.lane.b32.xlu2 %v3494_v8, %s3048_s13 }
 0x232   : > { %v3499_v33 = vpop.f32.mrf.mxu3 }
 0x238   : > { %v583_v27 = vpop.xlane.xlu0 %582 }
 0x239   : > { %v603_v5 = vsub.f32 %v461_v39, %v583_v27  ;;  %892 = vrot.lane.b32.xlu2 %v3501_v49, %s3049_s14  ;;  %v3518_v39 = vpack.c.b16 %v994_v7, %v994_v7 }
 0x23a   : > { %v696_v43 = vpop.f32.mrf.mxu3 }
 0x23b   : > { %v612_v2 = vmul.f32 1.442695, %v603_v5  ;;  %v3505_v30 = vpop.f32.mrf.mxu2 }
 0x23d   : > { %2858 = vpow2.f32 %v612_v2 }
 0x23e   : > { %2860 = vpow2.f32 %v618_v53 }
 0x241   : > { %998 = vrot.lane.b32.xlu2 %v3489_v31, %s3049_s14 }
 0x243   : > { %v3510_v36 = vpop.eup %2858  ;;  %v742_v60 = vpop.f32.mrf.mxu2 }
 0x244   : > { %v3512_v45 = vpop.f32.mrf.mxu3  ;;  %v629_v40 = vsel %vm425_vm1, %v3510_v36, 0.0  ;;  %v3538_v50 = vpop.eup %2860 }
 0x245   : > { %v860_v38 = vpack.c.bf16 %v3512_v45, %v3505_v30  ;;  %630 = vadd.xlane.f32.xlu0 %v629_v40  ;;  %v638_v48 = vsel %vm425_vm1, %v3538_v50, 0.0 }
 0x249   : > { %996 = vrot.lane.b32.xlu2 %v3518_v39, %s3049_s14 }
 0x24c   : > { %v765_v12 = vpop.f32.mrf.mxu3 }
 0x24d   : > { %v3568_v12 = vpack.c.b16 %v968_v59, %v968_v59 }
 0x251   : > { %1209 = vrot.lane.b32.xlu2 %v3343_v19, %s3050_s21 }
 0x254   : > { %v3524_v35 = vpop.f32.mrf.mxu3 }
 0x259   : > { %1293 = vrot.lane.b32.xlu2 %v3348_v22, %s3050_s21  ;;  %700 = vrot.lane.b32.xlu0 %v3446_v56, %s3048_s13  ;;  %s2675_s13 = sshll.u32 %s236_s12, 6 }
 0x25c   : > { %v857_v42 = vpop.f32.mrf.mxu3 }
 0x261   : > { %1314 = vrot.lane.b32.xlu2 %v3373_v52, %s3050_s21 }
 0x264   : > { %v963_v21 = vpop.f32.mrf.mxu3 }
 0x265   : > { %v3547_v62 = vadd.f32 %v963_v21, %v3281_v28 }
 0x267   : > { %v1080_v14 = vsel %vm425_vm1, %v3547_v62, -inf }
 0x26c   : > { %v965_v29 = vpop.f32.mrf.mxu3 }
 0x274   : > { %v1067_v37 = vpop.f32.mrf.mxu3 }
 0x275   : > { %v3534_v58 = vadd.f32 %v1067_v37, %v3310_v51  ;;  %v869_v37 = vpop.permute.xlu1 %868 }
 0x277   : > { %v1092_v54 = vsel %vm425_vm1, %v3534_v58, -inf }
 0x278   : > { %1093 = vmax.xlane.f32.xlu1 %v1092_v54 }
 0x27c   : > { %v1069_v61 = vpop.f32.mrf.mxu3 }
 0x27d   : > { %v1231_v61 = vpop.permute.xlu1 %1230 }
 0x281   : > { %v3540_v63 = vpop.f32.mrf.mxu2 }
 0x283   : > { %639 = vadd.xlane.f32.xlu0 %v638_v48 }
 0x284   : > { %v643_v10 = vpop.xlane.xlu2 %642 }
 0x289   : > { %v834_v3 = vpop.f32.mrf.mxu2 }
 0x28a   : > { %1081 = vmax.xlane.f32.xlu2 %v1080_v14  ;;  %v1236_v3 = vsel %vm681_vm5, %v1231_v61, 0 }
 0x28b   : > { %1245 = vmatpush.bf16.msrb.mxu3 %v1236_v3 }
 0x28c   : > { %v793_v20 = vpop.permute.xlu2 %792 }
 0x28d   : > { %v798_v59 = vsel %vm681_vm5, %v793_v20, 0  ;;  %v874_v20 = vsel %vm425_vm1, %v869_v37, 0 }
 0x291   : > { %v937_v44 = vpop.f32.mrf.mxu2 }
 0x292   : > { %v3553_v23 = vadd.f32 %v937_v44, %v3278_v24 }
 0x294   : > { %v1077_v27 = vsel %vm425_vm1, %v3553_v23, -inf  ;;  %v770_v5 = vpop.permute.xlu2 %769 }
 0x295   : > { %1078 = vmax.xlane.f32.xlu2 %v1077_v27  ;;  %v775_v43 = vsel %vm681_vm5, %v770_v5, 0 }
 0x296   : > { %784 = vmatpush.bf16.msra.mxu0 %v775_v43 }
 0x297   : > { %866 = vrot.lane.b32.xlu0 %v3555_v0, %s3049_s14 }
 0x299   : > { %v939_v2 = vpop.f32.mrf.mxu2 }
 0x29a   : > { %883 = vmatpush.bf16.xpose.msrb.mxu0 %v874_v20 }
 0x29c   : > { %v893_v7 = vpop.permute.xlu2 %892 }
 0x29f   : > { %972 = vrot.lane.b32.xlu0 %v3494_v8, %s3049_s14 }
 0x2a1   : > { %v1041_v60 = vpop.f32.mrf.mxu2 }
 0x2a2   : > { %v3566_v40 = vadd.f32 %v1041_v60, %v3330_v34 }
 0x2a4   : > { %v1089_v42 = vsel %vm425_vm1, %v3566_v40, -inf  ;;  %v999_v21 = vpop.permute.xlu2 %998 }
 0x2a5   : > { %1090 = vmax.xlane.f32.xlu1 %v1089_v42  ;;  %v900_v42 = vsel %vm425_vm1, %v895_v46, 0 }
 0x2a7   : > { %970 = vrot.lane.b32.xlu0 %v3568_v12, %s3049_s14  ;;  %s2767_s14 = sshll.u32 %s3034_s18, 6 }
 0x2a8   : > { %s2570_s18 = scalar_lea.hbm %s4269_s4, %s2767_s14 }
 0x2a9   : > { %v1043_v29 = vpop.f32.mrf.mxu2  ;;  %s2573_s29 = sshll.u32 %s2570_s18, 4  ;;  %s2574_s29 = int_to_ptr.hbm [resolvable:$true] %s2573_s29 }
 0x2aa   : > { %s2978_s5 = sshra.s32 %s2574_s29, 4  ;;  %s2979_s5 = int_to_ptr.hbm [resolvable:$true] %s2978_s5 }
 0x2ab   : > { %s2980_s6 = scalar_lea.hbm %s2979_s5, 64  ;;  %p2985_p1 = scmp.lt.s32.totalorder %s2979_s5, %s4269_s4 }
 0x2ac   : > { %v997_v17 = vpop.permute.xlu2 %996  ;;  %p2981_p12 = scmp.ne.s32.totalorder %s2979_s5, %s2980_s6  ;;  %p2986_p2 = scmp.lt.s32.totalorder %s2984_s9, %s2980_s6 }
 0x2ad   : > { %1427 = vrot.lane.b32.xlu2 %v3555_v0, %s3051_s22 }
 0x2ae   : > { %p2982_p13 = pnand %p2981_p12, %p3122_p4  ;;  %p2987_p3 = por %p2986_p2, %p2985_p1 }
 0x2af   : > { %1429 = vrot.lane.b32.xlu0 %v3353_v26, %s3051_s22 }
 0x2b0   : > { %p2983_p0 = pneg %p2982_p13 }
 0x2b2   : > { %p2988_p5 = pnand %p2987_p3, %p2983_p0 }
 0x2b4   : > { %v1210_v1 = vpop.permute.xlu2 %1209 }
 0x2b5   : > { %v1215_v53 = vsel %vm681_vm5, %v1210_v1, 0 }
 0x2b6   : > { %1224 = vmatpush.bf16.msrb.mxu2 %v1215_v53 }
 0x2b8   : > { %v631_v14 = vpop.xlane.xlu0 %630 }
 0x2b9   : > { %2862 = vrcp.f32 %v631_v14 }
 0x2ba   : > { %2864 = vrcp.f32 %v643_v10 }
 0x2bc   : > { %v1294_v54 = vpop.permute.xlu2 %1293 }
 0x2bd   : > { %v1299_v48 = vsel %vm681_vm5, %v1294_v54, 0 }
 0x2be   : > { %1308 = vmatpush.bf16.msra.mxu2 %v1299_v48 }
 0x2bf   : > { %v2863_v27 = vpop.eup %2862 }
 0x2c0   : > { %v659_v5 = vmul.f32 %v2863_v27, %v3510_v36  ;;  %v2865_v29 = vpop.eup %2864  ;;  %v1004_v36 = vsel %vm425_vm1, %v999_v21, 0 }
 0x2c1   : > { %v663_v1 = vmul.f32 %v2865_v29, %v3483_v16 }
 0x2c2   : > { %v667_v60 = vpack.c.bf16 %v659_v5, %v659_v5 }
 0x2c3   : > { %v671_v53 = vpack.c.bf16 %v663_v1, %v663_v1 }
 0x2c4   : > { %v1315_v41 = vpop.permute.xlu2 %1314 }
 0x2c5   : > { %v1320_v44 = vsel %vm681_vm5, %v1315_v41, 0 }
 0x2c6   : > { %1329 = vmatpush.bf16.msra.mxu3 %v1320_v44 }
 0x2cb   : > { %v701_v43 = vpop.permute.xlu0 %700 }
 0x2cc   : > { %v706_v2 = vsel %vm681_vm5, %v701_v43, 0 }
 0x2cd   : > { %715 = vmatpush.bf16.msrb.mxu1 %v706_v2 }
 0x2d0   : > { %2689 = vmatmul.msk.bf16.vlgmr.msrb.gmra.mxu1 %vm425_vm1, %v667_v60 }
 0x2d1   : > { %807 = vmatpush.bf16.msra.mxu1 %v798_v59 }
 0x2d5   : > { %909 = vmatpush.bf16.xpose.msrb.mxu1 %v900_v42 }
 0x2e0   : > { %2693 = vmatmul.msk.bf16.vlgmr.msra.gmra.mxu1 %vm425_vm1, %v671_v53 }
 0x2e1   : > { %1013 = vmatpush.bf16.xpose.msra.mxu1 %v1004_v36 }
 0x2eb   : > { %v1094_v37 = vpop.xlane.xlu1 %1093 }
 0x2f0   : > { %2697 = vmatmul.msk.bf16.vlgmr.msrb.gmra.mxu1 %vm425_vm1, %v893_v7 }
 0x2f6   : > { %v640_v46 = vpop.xlane.xlu0 %639 }
 0x2f7   : > { %2866 = vrcp.f32 %v640_v46 }
 0x2fd   : > { %v2867_v54 = vpop.eup %2866  ;;  %v1082_v61 = vpop.xlane.xlu2 %1081 }
 0x2fe   : > { %v1098_v10 = vsub.f32 %v3547_v62, %v1082_v61  ;;  %v662_v48 = vmul.f32 %v2867_v54, %v3538_v50  ;;  %v1102_v62 = vsub.f32 %v3534_v58, %v1094_v37 }
 0x300   : > { %v1109_v16 = vmul.f32 1.442695, %v1098_v10  ;;  %2701 = vmatmul.msk.bf16.vlgmr.msra.gmra.mxu1 %vm425_vm1, %v997_v17  ;;  %v670_v21 = vpack.c.bf16 %v662_v48, %v662_v48  ;;  %v1117_v50 = vmul.f32 1.442695, %v1102_v62 }
 0x302   : > { %2868 = vpow2.f32 %v1109_v16  ;;  %2692 = vmatmul.msk.bf16.vlgmr.msra.gmra.mxu0 %vm425_vm1, %v670_v21 }
 0x308   : > { %v2869_v3 = vpop.eup %2868  ;;  %v1079_v14 = vpop.xlane.xlu2 %1078 }
 0x309   : > { %v1097_v7 = vsub.f32 %v3553_v23, %v1079_v14  ;;  %v1128_v41 = vsel %vm425_vm1, %v2869_v3, 0.0  ;;  %v867_v44 = vpop.permute.xlu0 %866 }
 0x30a   : > { %1129 = vadd.xlane.f32.xlu0 %v1128_v41 }
 0x30b   : > { %v1107_v27 = vmul.f32 1.442695, %v1097_v7 }
 0x30d   : > { %2870 = vpow2.f32 %v1107_v27 }
 0x30e   : > { %2872 = vpow2.f32 %v1117_v50 }
 0x311   : > { %v973_v5 = vpop.permute.xlu0 %972 }
 0x312   : > { %2696 = vmatmul.msk.bf16.vlgmr.msrb.gmra.mxu0 %vm425_vm1, %v867_v44  ;;  %v978_v17 = vsel %vm425_vm1, %v973_v5, 0 }
 0x313   : > { %v2871_v43 = vpop.eup %2870  ;;  %987 = vmatpush.bf16.xpose.msra.mxu0 %v978_v17 }
 0x314   : > { %v1125_v2 = vsel %vm425_vm1, %v2871_v43, 0.0  ;;  %v3602_v59 = vpop.eup %2872 }
 0x315   : > { %1126 = vadd.xlane.f32.xlu1 %v1125_v2  ;;  %v1140_v42 = vsel %vm425_vm1, %v3602_v59, 0.0 }
 0x318   : > { %v1091_v23 = vpop.xlane.xlu1 %1090 }
 0x319   : > { %v1101_v60 = vsub.f32 %v3566_v40, %v1091_v23  ;;  %v971_v29 = vpop.permute.xlu0 %970  ;;  %v1428_v23 = vpop.permute.xlu2 %1427 }
 0x31b   : > { %v1115_v58 = vmul.f32 1.442695, %v1101_v60 }
 0x31d   : > { %2874 = vpow2.f32 %v1115_v58  ;;  %1141 = vadd.xlane.f32.xlu1 %v1140_v42 }
 0x31e   : > { %1452 = vrot.lane.b32.xlu0 %v3446_v56, %s3051_s22 }
 0x321   : > { %v1430_v48 = vpop.permute.xlu0 %1429 }
 0x322   : > { %2700 = vmatmul.msk.bf16.vlgmr.msra.gmra.mxu0 %vm425_vm1, %v971_v29 }
 0x323   : > { %v3610_v1 = vpop.eup %2874 }
 0x324   : > { %v1137_v53 = vsel %vm425_vm1, %v3610_v1, 0.0 }
 0x325   : > { %1138 = vadd.xlane.f32.xlu2 %v1137_v53 }
 0x326   : > { %1450 = vrot.lane.b32.xlu0 %v3501_v49, %s3051_s22 }
 0x32e   : > { %1521 = vrot.lane.b32.xlu0 %v3494_v8, %s3051_s22 }
 0x336   : > { %1498 = vrot.lane.b32.xlu1 %v3316_v55, %s3051_s22  ;;  %1519 = vrot.lane.b32.xlu0 %v3568_v12, %s3051_s22 }
 0x33d   : > { %1475 = vrot.lane.b32.xlu2 %v3343_v19, %s3051_s22 }
 0x33e   : > { %1565 = vrot.lane.b32.xlu1 %v3441_v57, %s3051_s22  ;;  %1567 = vrot.lane.b32.xlu0 %v3348_v22, %s3051_s22 }
 0x345   : > { %1473 = vrot.lane.b32.xlu2 %v3387_v4, %s3051_s22 }
 0x346   : > { %1590 = vrot.lane.b32.xlu0 %v3373_v52, %s3051_s22 }
 0x34d   : > { %1496 = vrot.lane.b32.xlu2 %v3394_v9, %s3051_s22  ;;  %v3634_v40 = vpop.f32.mrf.mxu1 }
 0x355   : > { %1544 = vrot.lane.b32.xlu2 %v3489_v31, %s3051_s22  ;;  %v719_v36 = vpop.f32.mrf.mxu1 }
 0x35d   : > { %1542 = vrot.lane.b32.xlu2 %v3518_v39, %s3051_s22  ;;  %v3640_v20 = vpop.f32.mrf.mxu1 }
 0x365   : > { %1588 = vrot.lane.b32.xlu2 %v3399_v15, %s3051_s22  ;;  %v811_v46 = vpop.f32.mrf.mxu1 }
 0x36d   : > { %v911_v54 = vpop.f32.mrf.mxu1 }
 0x36e   : > { %v3645_v61 = vadd.f32 %v911_v54, %v3464_v32 }
 0x370   : > { %v1074_v10 = vsel %vm425_vm1, %v3645_v61, -inf }
 0x371   : > { %1075 = vmax.xlane.f32.xlu1 %v1074_v10  ;;  %v1435_v10 = vsel %vm425_vm1, %v1430_v48, 0 }
 0x375   : > { %v913_v16 = vpop.f32.mrf.mxu1 }
 0x37d   : > { %v1015_v21 = vpop.f32.mrf.mxu1  ;;  %v1130_v37 = vpop.xlane.xlu0 %1129 }
 0x37e   : > { %2876 = vrcp.f32 %v1130_v37  ;;  %v3654_v17 = vadd.f32 %v1015_v21, %v3425_v47 }
 0x37f   : > { %v3649_v14 = vpop.f32.mrf.mxu0 }
 0x380   : > { %v1086_v2 = vsel %vm425_vm1, %v3654_v17, -inf }
 0x384   : > { %v2877_v41 = vpop.eup %2876 }
 0x385   : > { %v1154_v44 = vmul.f32 %v2877_v41, %v2869_v3  ;;  %v1017_v62 = vpop.f32.mrf.mxu1 }
 0x387   : > { %v1162_v27 = vpack.c.bf16 %v1154_v44, %v1154_v44  ;;  %v788_v50 = vpop.f32.mrf.mxu0 }
 0x388   : > { %v1127_v5 = vpop.xlane.xlu1 %1126 }
 0x389   : > { %2878 = vrcp.f32 %v1127_v5  ;;  %2707 = vmatmul.msk.bf16.vlgmr.msrb.gmra.mxu3 %vm425_vm1, %v1162_v27 }
 0x38e   : > { %1087 = vmax.xlane.f32.xlu2 %v1086_v2 }
 0x38f   : > { %v2879_v60 = vpop.eup %2878  ;;  %v885_v58 = vpop.f32.mrf.mxu0 }
 0x390   : > { %v1153_v42 = vmul.f32 %v2879_v60, %v2871_v43  ;;  %v3660_v3 = vadd.f32 %v885_v58, %v3265_v18  ;;  %v1142_v29 = vpop.xlane.xlu1 %1141  ;;  %v1453_v53 = vpop.permute.xlu0 %1452 }
 0x391   : > { %2880 = vrcp.f32 %v1142_v29  ;;  %v1458_v36 = vsel %vm425_vm1, %v1453_v53, 0 }
 0x392   : > { %v1161_v46 = vpack.c.bf16 %v1153_v42, %v1153_v42  ;;  %v1071_v54 = vsel %vm425_vm1, %v3660_v3, -inf  ;;  %1467 = vmatpush.bf16.xpose.msrb.mxu3 %v1458_v36 }
 0x393   : > { %1072 = vmax.xlane.f32.xlu0 %v1071_v54 }
 0x394   : > { %2706 = vmatmul.msk.bf16.vlgmr.msrb.gmra.mxu2 %vm425_vm1, %v1161_v46 }
 0x395   : > { %1444 = vmatpush.bf16.xpose.msrb.mxu2 %v1435_v10 }
 0x397   : > { %v2881_v43 = vpop.eup %2880  ;;  %v887_v16 = vpop.f32.mrf.mxu0 }
 0x398   : > { %v1158_v21 = vmul.f32 %v2881_v43, %v3602_v59  ;;  %v1139_v37 = vpop.xlane.xlu2 %1138  ;;  %v1451_v41 = vpop.permute.xlu0 %1450 }
 0x399   : > { %2882 = vrcp.f32 %v1139_v37 }
 0x39a   : > { %v1166_v44 = vpack.c.bf16 %v1158_v21, %v1158_v21 }
 0x39c   : > { %2711 = vmatmul.msk.bf16.vlgmr.msra.gmra.mxu3 %vm425_vm1, %v1166_v44 }
 0x39f   : > { %v2883_v62 = vpop.eup %2882  ;;  %v989_v27 = vpop.f32.mrf.mxu0 }
 0x3a0   : > { %v1157_v50 = vmul.f32 %v2883_v62, %v3610_v1  ;;  %v3671_v5 = vadd.f32 %v989_v27, %v3422_v13  ;;  %v1476_v48 = vpop.permute.xlu2 %1475  ;;  %v1522_v2 = vpop.permute.xlu0 %1521 }
 0x3a1   : > { %v1481_v59 = vsel %vm425_vm1, %v1476_v48, 0  ;;  %v1527_v10 = vsel %vm425_vm1, %v1522_v2, 0 }
 0x3a2   : > { %v1165_v60 = vpack.c.bf16 %v1157_v50, %v1157_v50  ;;  %v1083_v58 = vsel %vm425_vm1, %v3671_v5, -inf }
 0x3a3   : > { %1084 = vmax.xlane.f32.xlu1 %v1083_v58 }
 0x3a4   : > { %2710 = vmatmul.msk.bf16.vlgmr.msra.gmra.mxu2 %vm425_vm1, %v1165_v60 }
 0x3a5   : > { %1490 = vmatpush.bf16.xpose.msra.mxu2 %v1481_v59 }
 0x3a6   : > { %1188 = vrot.lane.b32.xlu2 %v3446_v56, %s3050_s21 }
 0x3a7   : > { %v991_v42 = vpop.f32.mrf.mxu0 }
 0x3a8   : > { %v1474_v1 = vpop.permute.xlu2 %1473  ;;  %v1520_v29 = vpop.permute.xlu0 %1519 }
 0x3a9   : > { %v1499_v53 = vpop.permute.xlu1 %1498 }
 0x3aa   : > { %v1504_v36 = vsel %vm425_vm1, %v1499_v53, 0 }
 0x3ab   : > { %1513 = vmatpush.bf16.xpose.msra.mxu3 %v1504_v36 }
 0x3ac   : > { %2721 = vmatmul.msk.bf16.vlgmr.msrb.gmra.mxu3 %vm425_vm1, %v1451_v41 }
 0x3ae   : > { %1251 = vrot.lane.b32.xlu2 %v3494_v8, %s3050_s21 }
 0x3b0   : > { %v1497_v46 = vpop.permute.xlu2 %1496  ;;  %v1568_v54 = vpop.permute.xlu0 %1567 }
 0x3b1   : > { %v1573_v41 = vsel %vm425_vm1, %v1568_v54, 0  ;;  %v1566_v44 = vpop.permute.xlu1 %1565 }
 0x3b4   : > { %2720 = vmatmul.msk.bf16.vlgmr.msrb.gmra.mxu2 %vm425_vm1, %v1428_v23 }
 0x3b5   : > { %1536 = vmatpush.bf16.xpose.msrb.mxu2 %v1527_v10 }
 0x3b6   : > { %1770 = vrot.lane.b32.xlu2 %v3316_v55, %s3052_s24 }
 0x3b8   : > { %v1545_v43 = vpop.permute.xlu2 %1544  ;;  %v1591_v16 = vpop.permute.xlu0 %1590 }
 0x3b9   : > { %v1550_v21 = vsel %vm425_vm1, %v1545_v43, 0  ;;  %v1596_v37 = vsel %vm425_vm1, %v1591_v16, 0 }
 0x3ba   : > { %1559 = vmatpush.bf16.xpose.msrb.mxu3 %v1550_v21 }
 0x3bc   : > { %2723 = vmatmul.msk.bf16.vlgmr.msra.gmra.mxu3 %vm425_vm1, %v1497_v46 }
 0x3c0   : > { %v1543_v23 = vpop.permute.xlu2 %1542 }
 0x3c2   : > { %1605 = vmatpush.bf16.xpose.msra.mxu3 %v1596_v37 }
 0x3c4   : > { %2722 = vmatmul.msk.bf16.vlgmr.msra.gmra.mxu2 %vm425_vm1, %v1474_v1 }
 0x3c5   : > { %1582 = vmatpush.bf16.xpose.msra.mxu2 %v1573_v41 }
 0x3c8   : > { %v1589_v62 = vpop.permute.xlu2 %1588 }
 0x3cc   : > { %2725 = vmatmul.msk.bf16.vlgmr.msrb.gmra.mxu3 %vm425_vm1, %v1543_v23 }
 0x3d4   : > { %2724 = vmatmul.msk.bf16.vlgmr.msrb.gmra.mxu2 %vm425_vm1, %v1520_v29 }
 0x3dc   : > { %2727 = vmatmul.msk.bf16.vlgmr.msra.gmra.mxu3 %vm425_vm1, %v1589_v62 }
 0x3e4   : > { %v1076_v27 = vpop.xlane.xlu1 %1075  ;;  %2726 = vmatmul.msk.bf16.vlgmr.msra.gmra.mxu2 %vm425_vm1, %v1566_v44 }
 0x3e5   : > { %v1096_v50 = vsub.f32 %v3645_v61, %v1076_v27 }
 0x3e7   : > { %v1105_v48 = vmul.f32 1.442695, %v1096_v50 }
 0x3e9   : > { %2884 = vpow2.f32 %v1105_v48 }
 0x3ef   : > { %v3697_v2 = vpop.eup %2884 }
 0x3f0   : > { %v1122_v60 = vsel %vm425_vm1, %v3697_v2, 0.0 }
 0x3f1   : > { %1123 = vadd.xlane.f32.xlu0 %v1122_v60 }
 0x401   : > { %v1088_v58 = vpop.xlane.xlu2 %1087 }
 0x402   : > { %v1100_v59 = vsub.f32 %v3654_v17, %v1088_v58 }
 0x404   : > { %v1113_v42 = vmul.f32 1.442695, %v1100_v59 }
 0x406   : > { %2886 = vpow2.f32 %v1113_v42  ;;  %v1073_v1 = vpop.xlane.xlu0 %1072 }
 0x407   : > { %v1095_v29 = vsub.f32 %v3660_v3, %v1073_v1 }
 0x409   : > { %v1103_v53 = vmul.f32 1.442695, %v1095_v29 }
 0x40b   : > { %2888 = vpow2.f32 %v1103_v53 }
 0x40c   : > { %v3703_v36 = vpop.eup %2886  ;;  %v3705_v61 = vpop.f32.mrf.mxu3 }
 0x40d   : > { %v1134_v46 = vsel %vm425_vm1, %v3703_v36, 0.0 }
 0x40e   : > { %1135 = vadd.xlane.f32.xlu0 %v1134_v46 }
 0x411   : > { %v3709_v54 = vpop.eup %2888 }
 0x412   : > { %v1119_v17 = vsel %vm425_vm1, %v3709_v54, 0.0 }
 0x413   : > { %1120 = vadd.xlane.f32.xlu1 %v1119_v17  ;;  %v1189_v17 = vpop.permute.xlu2 %1188 }
 0x414   : > { %v1249_v10 = vpop.f32.mrf.mxu3 }
 0x415   : > { %v1194_v10 = vsel %vm681_vm5, %v1189_v17, 0 }
 0x416   : > { %v1085_v42 = vpop.xlane.xlu1 %1084  ;;  %1203 = vmatpush.bf16.msrb.mxu1 %v1194_v10 }
 0x417   : > { %v3713_v43 = vpop.f32.mrf.mxu2  ;;  %v1099_v1 = vsub.f32 %v3671_v5, %v1085_v42 }
 0x419   : > { %v1111_v46 = vmul.f32 1.442695, %v1099_v1 }
 0x41b   : > { %2890 = vpow2.f32 %v1111_v46 }
 0x41f   : > { %v1228_v16 = vpop.f32.mrf.mxu2  ;;  %v3717_v21 = vpop.f32.mrf.mxu3 }
 0x422   : > { %1272 = vrot.lane.b32.xlu0 %v3489_v31, %s3050_s21 }
 0x427   : > { %v3721_v37 = vpop.f32.mrf.mxu2  ;;  %v1333_v41 = vpop.f32.mrf.mxu3 }
 0x42a   : > { %1749 = vrot.lane.b32.xlu0 %v3343_v19, %s3052_s24 }
 0x42c   : > { %1167 = vrot.lane.b32.xlu1 %v3353_v26, %s3050_s21 }
 0x42f   : > { %v1312_v44 = vpop.f32.mrf.mxu2  ;;  %v1469_v62 = vpop.f32.mrf.mxu3 }
 0x430   : > { %v3730_v27 = vadd.f32 %v1469_v62, %v3464_v32  ;;  %v3742_v44 = vpop.eup %2890 }
 0x431   : > { %v1131_v62 = vsel %vm425_vm1, %v3742_v44, 0.0 }
 0x432   : > { %1812 = vrot.lane.b32.xlu0 %v3489_v31, %s3052_s24  ;;  %v1614_v50 = vsel %vm425_vm1, %v3730_v27, -inf }
 0x433   : > { %1615 = vmax.xlane.f32.xlu2 %v1614_v50 }
 0x437   : > { %v3736_v48 = vpop.f32.mrf.mxu2  ;;  %v1471_v60 = vpop.f32.mrf.mxu3 }
 0x43a   : > { %1854 = vrot.lane.b32.xlu0 %v3373_v52, %s3052_s24 }
 0x43f   : > { %v1448_v58 = vpop.f32.mrf.mxu2  ;;  %v1515_v59 = vpop.f32.mrf.mxu3 }
 0x440   : > { %v3749_v5 = vadd.f32 %v1515_v59, %v3281_v28 }
 0x442   : > { %v1620_v1 = vsel %vm425_vm1, %v3749_v5, -inf }
 0x447   : > { %v1492_v29 = vpop.f32.mrf.mxu2  ;;  %v1517_v53 = vpop.f32.mrf.mxu3 }
 0x448   : > { %v3756_v46 = vadd.f32 %v1492_v29, %v3278_v24 }
 0x44f   : > { %v1494_v16 = vpop.f32.mrf.mxu2  ;;  %v1561_v41 = vpop.f32.mrf.mxu3 }
 0x450   : > { %v1617_v16 = vsel %vm425_vm1, %v3756_v46, -inf }
 0x456   : > { %1132 = vadd.xlane.f32.xlu1 %v1131_v62 }
 0x457   : > { %v3746_v50 = vpop.f32.mrf.mxu2  ;;  %v1563_v60 = vpop.f32.mrf.mxu3 }
 0x45f   : > { %v1540_v58 = vpop.f32.mrf.mxu2  ;;  %v3751_v42 = vpop.f32.mrf.mxu3 }
 0x464   : > { %1621 = vmax.xlane.f32.xlu0 %v1620_v1  ;;  %v1124_v53 = vpop.xlane.xlu0 %1123 }
 0x465   : > { %2892 = vrcp.f32 %v1124_v53  ;;  %v1252_v53 = vpop.permute.xlu2 %1251 }
 0x466   : > { %v1257_v7 = vsel %vm681_vm5, %v1252_v53, 0 }
 0x467   : > { %v1584_v17 = vpop.f32.mrf.mxu2  ;;  %v1609_v10 = vpop.f32.mrf.mxu3 }
 0x468   : > { %v3762_v60 = vadd.f32 %v1584_v17, %v3330_v34 }
 0x46a   : > { %v1629_v29 = vsel %vm425_vm1, %v3762_v60, -inf }
 0x46b   : > { %v2893_v62 = vpop.eup %2892 }
 0x46c   : > { %v1152_v59 = vmul.f32 %v2893_v62, %v3697_v2  ;;  %1618 = vmax.xlane.f32.xlu0 %v1617_v16 }
 0x46d   : > { %v1771_v2 = vpop.permute.xlu2 %1770 }
 0x46e   : > { %v1160_v58 = vpack.c.bf16 %v1152_v59, %v1152_v59  ;;  %v1776_v10 = vsel %vm681_vm5, %v1771_v2, 0  ;;  %v421_v59 = vld [vmem:[%s4268_s3] sm:$0xf] }
 0x46f   : > { %1728 = vrot.lane.b32.xlu1 %v3446_v56, %s3052_s24  ;;  %v1586_v1 = vpop.f32.mrf.mxu2  ;;  %1785 = vmatpush.bf16.msrb.mxu3 %v1776_v10 }
 0x470   : > { %2705 = vmatmul.msk.bf16.vlgmr.msrb.gmra.mxu1 %vm425_vm1, %v1160_v58 }
 0x474   : > { %1630 = vmax.xlane.f32.xlu0 %v1629_v29  ;;  %v1396_v29 = vsel %vm681_vm5, %v421_v59, 0  ;;  %v3789_v59 = vadd.f32 %v1561_v41, %v3425_v47 }
 0x476   : > { %v1626_v53 = vsel %vm425_vm1, %v3789_v59, -inf }
 0x477   : > { %1833 = vrot.lane.b32.xlu1 %v3348_v22, %s3052_s24 }
 0x47f   : > { %1933 = vrot.lane.b32.xlu1 %v3353_v26, %s3053_s26 }
 0x481   : > { %v1136_v17 = vpop.xlane.xlu0 %1135 }
 0x482   : > { %2894 = vrcp.f32 %v1136_v17 }
 0x486   : > { %v1121_v62 = vpop.xlane.xlu1 %1120 }
 0x487   : > { %2896 = vrcp.f32 %v1121_v62 }
 0x488   : > { %1956 = vrot.lane.b32.xlu0 %v3446_v56, %s3053_s26  ;;  %v2895_v16 = vpop.eup %2894 }
 0x489   : > { %v1156_v58 = vmul.f32 %v2895_v16, %v3703_v36 }
 0x48b   : > { %v1164_v10 = vpack.c.bf16 %v1156_v58, %v1156_v58 }
 0x48d   : > { %v2897_v17 = vpop.eup %2896 }
 0x48e   : > { %v1151_v3 = vmul.f32 %v2897_v17, %v3709_v54  ;;  %v859_v54 = vpack.c.bf16 %v3634_v40, %v3499_v33 }
 0x490   : > { %v1159_v62 = vpack.c.bf16 %v1151_v3, %v1151_v3 }
 0x494   : > { %v1273_v1 = vpop.permute.xlu0 %1272 }
 0x495   : > { %v1278_v2 = vsel %vm681_vm5, %v1273_v1, 0 }
 0x496   : > { %1287 = vmatpush.bf16.msra.mxu1 %v1278_v2 }
 0x499   : > { %2709 = vmatmul.msk.bf16.vlgmr.msra.gmra.mxu1 %vm425_vm1, %v1164_v10 }
 0x49a   : > { %1405 = vmatpush.bf16.msrb.mxu1 %v1396_v29  ;;  %v4272_v29 = vpack.c.bf16 %v3640_v20, %v3649_v14 }
 0x49c   : > { %v1750_v23 = vpop.permute.xlu0 %1749 }
 0x49d   : > { %v1755_v6 = vsel %vm681_vm5, %v1750_v23, 0 }
 0x49e   : > { %v1168_v36 = vpop.permute.xlu1 %1167  ;;  %1764 = vmatpush.bf16.msrb.mxu2 %v1755_v6 }
 0x49f   : > { %v1173_v16 = vsel %vm681_vm5, %v1168_v36, 0 }
 0x4a0   : > { %1182 = vmatpush.bf16.msrb.mxu0 %v1173_v16 }
 0x4a3   : > { %2704 = vmatmul.msk.bf16.vlgmr.msrb.gmra.mxu0 %vm425_vm1, %v1159_v62 }
 0x4a4   : > { %1266 = vmatpush.bf16.msra.mxu0 %v1257_v7  ;;  %v1813_v6 = vpop.permute.xlu0 %1812  ;;  %v3799_v7 = vadd.f32 %v3751_v42, %v3310_v51 }
 0x4a5   : > { %v1818_v36 = vsel %vm681_vm5, %v1813_v6, 0  ;;  %v422_v6 = vld [vmem:[%s4268_s3 + $0x4] sm:$0xf] }
 0x4a6   : > { %v1616_v58 = vpop.xlane.xlu2 %1615  ;;  %v1632_v3 = vsel %vm425_vm1, %v3799_v7, -inf }
 0x4a7   : > { %v1636_v23 = vsub.f32 %v3730_v27, %v1616_v58 }
 0x4a9   : > { %v1645_v1 = vmul.f32 1.442695, %v1636_v23  ;;  %1627 = vmax.xlane.f32.xlu1 %v1626_v53  ;;  %2716 = vmatmul.msk.bf16.vlgmr.msrb.gmra.mxu1 %vm425_vm1, %v859_v54 }
 0x4ab   : > { %2898 = vpow2.f32 %v1645_v1  ;;  %v1352_v1 = vsel %vm681_vm5, %v422_v6, 0  ;;  %v4275_v6 = vpack.c.bf16 %v3717_v21, %v3721_v37 }
 0x4ac   : > { %v1855_v40 = vpop.permute.xlu0 %1854  ;;  %1361 = vmatpush.bf16.msrb.mxu0 %v1352_v1  ;;  %v3905_v1 = vadd.f32 %v3736_v48, %v3265_v18  ;;  %v3920_v48 = vadd.f32 %v3746_v50, %v3422_v13 }
 0x4ad   : > { %v1860_v27 = vsel %vm681_vm5, %v1855_v40, 0 }
 0x4ae   : > { %1869 = vmatpush.bf16.msra.mxu3 %v1860_v27 }
 0x4b1   : > { %v3803_v41 = vpop.eup %2898  ;;  %1633 = vmax.xlane.f32.xlu1 %v1632_v3 }
 0x4b2   : > { %v1662_v33 = vsel %vm425_vm1, %v3803_v41, 0.0 }
 0x4b3   : > { %1663 = vadd.xlane.f32.xlu2 %v1662_v33 }
 0x4b9   : > { %2717 = vmatmul.msk.bf16.gmra.mxu1 %vm425_vm1, %v860_v38  ;;  %v4273_v38 = vpack.c.bf16 %v3524_v35, %v3540_v63 }
 0x4c9   : > { %v1133_v42 = vpop.xlane.xlu1 %1132  ;;  %2718 = vmatmul.msk.bf16.gmra.mxu1 %vm425_vm1, %v4272_v29 }
 0x4ca   : > { %2900 = vrcp.f32 %v1133_v42  ;;  %1931 = vrot.lane.b32.xlu1 %v3555_v0, %s3053_s26 }
 0x4cb   : > { %2002 = vrot.lane.b32.xlu2 %v3316_v55, %s3053_s26 }
 0x4d0   : > { %v2901_v2 = vpop.eup %2900 }
 0x4d1   : > { %v1155_v10 = vmul.f32 %v2901_v2, %v3742_v44 }
 0x4d3   : > { %v1163_v17 = vpack.c.bf16 %v1155_v10, %v1155_v10 }
 0x4d5   : > { %2708 = vmatmul.msk.bf16.vlgmr.msra.gmra.mxu0 %vm425_vm1, %v1163_v17 }
 0x4d7   : > { %v1622_v30 = vpop.xlane.xlu0 %1621 }
 0x4d8   : > { %v1638_v45 = vsub.f32 %v3749_v5, %v1622_v30 }
 0x4d9   : > { %2719 = vmatmul.msk.bf16.gmra.mxu1 %vm425_vm1, %v4273_v38 }
 0x4da   : > { %v1649_v20 = vmul.f32 1.442695, %v1638_v45 }
 0x4dc   : > { %2902 = vpow2.f32 %v1649_v20 }
 0x4df   : > { %v1619_v0 = vpop.xlane.xlu0 %1618 }
 0x4e0   : > { %v1637_v14 = vsub.f32 %v3756_v46, %v1619_v0 }
 0x4e1   : > { %v1729_v16 = vpop.permute.xlu1 %1728 }
 0x4e2   : > { %v3829_v44 = vpop.eup %2902  ;;  %v1647_v62 = vmul.f32 1.442695, %v1637_v14  ;;  %v1734_v58 = vsel %vm681_vm5, %v1729_v16, 0 }
 0x4e3   : > { %1743 = vmatpush.bf16.msra.mxu1 %v1734_v58  ;;  %v1668_v5 = vsel %vm425_vm1, %v3829_v44, 0.0 }
 0x4e4   : > { %2904 = vpow2.f32 %v1647_v62  ;;  %1669 = vadd.xlane.f32.xlu0 %v1668_v5  ;;  %v4274_v62 = vpack.c.bf16 %v3705_v61, %v3713_v43 }
 0x4e7   : > { %1827 = vmatpush.bf16.msrb.mxu1 %v1818_v36 }
 0x4e9   : > { %v1834_v35 = vpop.permute.xlu1 %1833 }
 0x4ea   : > { %v3834_v63 = vpop.eup %2904  ;;  %v1839_v46 = vsel %vm681_vm5, %v1834_v35, 0 }
 0x4eb   : > { %1848 = vmatpush.bf16.msra.mxu2 %v1839_v46  ;;  %v1665_v54 = vsel %vm425_vm1, %v3834_v63, 0.0 }
 0x4ec   : > { %1666 = vadd.xlane.f32.xlu0 %v1665_v54 }
 0x4ed   : > { %v1205_v23 = vpop.f32.mrf.mxu1 }
 0x4f1   : > { %v1934_v3 = vpop.permute.xlu1 %1933 }
 0x4f2   : > { %v1939_v16 = vsel %vm425_vm1, %v1934_v3, 0 }
 0x4f5   : > { %v1207_v53 = vpop.f32.mrf.mxu1 }
 0x500   : > { %1954 = vrot.lane.b32.xlu0 %v3501_v49, %s3053_s26 }
 0x508   : > { %1977 = vrot.lane.b32.xlu0 %v3387_v4, %s3053_s26  ;;  %v1631_v4 = vpop.xlane.xlu0 %1630 }
 0x509   : > { %v1641_v45 = vsub.f32 %v3762_v60, %v1631_v4 }
 0x510   : > { %2000 = vrot.lane.b32.xlu0 %v3394_v9, %s3053_s26 }
 0x516   : > { %v1289_v33 = vpop.f32.mrf.mxu1 }
 0x518   : > { %2025 = vrot.lane.b32.xlu0 %v3494_v8, %s3053_s26 }
 0x51c   : > { %v1628_v40 = vpop.xlane.xlu1 %1627 }
 0x51d   : > { %v1640_v27 = vsub.f32 %v3789_v59, %v1628_v40 }
 0x51e   : > { %v1291_v42 = vpop.f32.mrf.mxu1 }
 0x51f   : > { %v1653_v29 = vmul.f32 1.442695, %v1640_v27  ;;  %v1611_v27 = vsel %vm425_vm1, %v3905_v1, -inf  ;;  %v1623_v42 = vsel %vm425_vm1, %v3920_v48, -inf }
 0x520   : > { %v1184_v2 = vpop.f32.mrf.mxu0  ;;  %2023 = vrot.lane.b32.xlu0 %v3568_v12, %s3053_s26  ;;  %v1655_v12 = vmul.f32 1.442695, %v1641_v45 }
 0x521   : > { %2906 = vpow2.f32 %v1653_v29  ;;  %v1335_v49 = vpack.c.bf16 %v1205_v23, %v1184_v2 }
 0x523   : > { %2712 = vmatmul.msk.bf16.vlgmr.msrb.gmra.mxu0 %vm425_vm1, %v1335_v49 }
 0x524   : > { %v1634_v9 = vpop.xlane.xlu1 %1633 }
 0x525   : > { %v1642_v10 = vsub.f32 %v3799_v7, %v1634_v9 }
 0x526   : > { %v1664_v17 = vpop.xlane.xlu2 %1663  ;;  %v3894_v23 = vpop.f32.mrf.mxu1 }
 0x527   : > { %v3856_v30 = vpop.eup %2906  ;;  %v1657_v59 = vmul.f32 1.442695, %v1642_v10  ;;  %2908 = vrcp.f32 %v1664_v17 }
 0x528   : > { %v1186_v38 = vpop.f32.mrf.mxu0  ;;  %v1674_v20 = vsel %vm425_vm1, %v3856_v30, 0.0  ;;  %2094 = vrot.lane.b32.xlu0 %v3373_v52, %s3053_s26 }
 0x529   : > { %2910 = vpow2.f32 %v1657_v59  ;;  %1675 = vadd.xlane.f32.xlu1 %v1674_v20 }
 0x52a   : > { %2912 = vpow2.f32 %v1655_v12 }
 0x52d   : > { %v2909_v0 = vpop.eup %2908 }
 0x52e   : > { %v1692_v7 = vmul.f32 %v2909_v0, %v3803_v41  ;;  %v3909_v40 = vpop.f32.mrf.mxu1  ;;  %v2003_v9 = vpop.permute.xlu2 %2002 }
 0x52f   : > { %v3864_v14 = vpop.eup %2910  ;;  %v2008_v0 = vsel %vm425_vm1, %v2003_v9, 0 }
 0x530   : > { %v1700_v36 = vpack.c.bf16 %v1692_v7, %v1692_v7  ;;  %v1680_v60 = vsel %vm425_vm1, %v3864_v14, 0.0  ;;  %2092 = vrot.lane.b32.xlu0 %v3399_v15, %s3053_s26  ;;  %v3876_v41 = vpop.eup %2912  ;;  %v1957_v15 = vpop.permute.xlu0 %1956 }
 0x531   : > { %1681 = vadd.xlane.f32.xlu2 %v1680_v60  ;;  %v1677_v58 = vsel %vm425_vm1, %v3876_v41, 0.0  ;;  %v1962_v3 = vsel %vm425_vm1, %v1957_v15, 0 }
 0x532   : > { %2729 = vmatmul.msk.bf16.vlgmr.msra.gmra.mxu1 %vm425_vm1, %v1700_v36 }
 0x533   : > { %1948 = vmatpush.bf16.xpose.msra.mxu1 %v1939_v16  ;;  %2713 = vmatmul.msk.bf16.gmra.mxu0 %vm425_vm1, %v4274_v62 }
 0x536   : > { %v3914_v21 = vpop.f32.mrf.mxu1 }
 0x538   : > { %2069 = vrot.lane.b32.xlu0 %v3441_v57, %s3053_s26 }
 0x539   : > { %1678 = vadd.xlane.f32.xlu2 %v1677_v58 }
 0x53c   : > { %v1932_v49 = vpop.permute.xlu1 %1931 }
 0x53e   : > { %v3916_v37 = vpop.f32.mrf.mxu1 }
 0x540   : > { %1707 = vrot.lane.b32.xlu0 %v3353_v26, %s3052_s24 }
 0x542   : > { %1979 = vrot.lane.b32.xlu1 %v3343_v19, %s3053_s26 }
 0x548   : > { %1791 = vrot.lane.b32.xlu0 %v3494_v8, %s3052_s24  ;;  %s238_s24 = scalar_lea.vmem [#allocation2], %s2675_s13 }
 0x550   : > { %2253 = vrot.lane.b32.xlu0 %v3343_v19, %s3054_s7 }
 0x551   : > { %2048 = vrot.lane.b32.xlu2 %v3489_v31, %s3053_s26 }
 0x552   : > { %v1268_v61 = vpop.f32.mrf.mxu0 }
 0x553   : > { %v1337_v43 = vpack.c.bf16 %v1289_v33, %v1268_v61 }
 0x555   : > { %2714 = vmatmul.msk.bf16.gmra.mxu0 %vm425_vm1, %v1337_v43 }
 0x557   : > { %v1670_v5 = vpop.xlane.xlu0 %1669 }
 0x558   : > { %2914 = vrcp.f32 %v1670_v5 }
 0x559   : > { %2046 = vrot.lane.b32.xlu2 %v3518_v39, %s3053_s26 }
 0x55a   : > { %v1270_v57 = vpop.f32.mrf.mxu0 }
 0x55e   : > { %v2915_v35 = vpop.eup %2914 }
 0x55f   : > { %v1694_v46 = vmul.f32 %v2915_v35, %v3829_v44  ;;  %v1667_v54 = vpop.xlane.xlu0 %1666 }
 0x560   : > { %2916 = vrcp.f32 %v1667_v54 }
 0x561   : > { %v1702_v53 = vpack.c.bf16 %v1694_v46, %v1694_v46  ;;  %2071 = vrot.lane.b32.xlu2 %v3348_v22, %s3053_s26  ;;  %s2571_s26 = sshll.u32 %s238_s24, 4  ;;  %s2572_s26 = int_to_ptr.vmem [resolvable:$true] %s2571_s26 }
 0x563   : > { %2731 = vmatmul.msk.bf16.vlgmr.msrb.gmra.mxu3 %vm425_vm1, %v1702_v53 }
 0x565   : > { %2715 = vmatmul.msk.bf16.gmra.mxu0 %vm425_vm1, %v4275_v6 }
 0x566   : > { %v2917_v39 = vpop.eup %2916 }
 0x567   : > { %v1693_v44 = vmul.f32 %v2917_v39, %v3834_v63  ;;  %v3922_v63 = vpop.f32.mrf.mxu1 }
 0x569   : > { %v1701_v33 = vpack.c.bf16 %v1693_v44, %v1693_v44 }
 0x56b   : > { %2730 = vmatmul.msk.bf16.vlgmr.msrb.gmra.mxu2 %vm425_vm1, %v1701_v33 }
 0x56c   : > { %1612 = vmax.xlane.f32.xlu1 %v1611_v27  ;;  %1971 = vmatpush.bf16.xpose.msrb.mxu2 %v1962_v3 }
 0x56f   : > { %v3926_v2 = vpop.f32.mrf.mxu1 }
 0x572   : > { %v1955_v29 = vpop.permute.xlu0 %1954 }
 0x577   : > { %v3928_v17 = vpop.f32.mrf.mxu1 }
 0x57a   : > { %v1978_v4 = vpop.permute.xlu0 %1977 }
 0x57f   : > { %v3935_v12 = vpop.f32.mrf.mxu1 }
 0x582   : > { %v2001_v59 = vpop.permute.xlu0 %2000 }
 0x58a   : > { %1624 = vmax.xlane.f32.xlu2 %v1623_v42  ;;  %v2026_v60 = vpop.permute.xlu0 %2025 }
 0x592   : > { %v2024_v35 = vpop.permute.xlu0 %2023 }
 0x59c   : > { %v1676_v10 = vpop.xlane.xlu1 %1675 }
 0x59d   : > { %2918 = vrcp.f32 %v1676_v10 }
 0x5a2   : > { %2211 = vrot.lane.b32.xlu2 %v3353_v26, %s3054_s7 }
 0x5a3   : > { %v2919_v45 = vpop.eup %2918 }
 0x5a4   : > { %v1696_v50 = vmul.f32 %v2919_v45, %v3856_v30  ;;  %v1682_v38 = vpop.xlane.xlu2 %1681 }
 0x5a5   : > { %2920 = vrcp.f32 %v1682_v38 }
 0x5a6   : > { %v1704_v20 = vpack.c.bf16 %v1696_v50, %v1696_v50 }
 0x5a8   : > { %2733 = vmatmul.msk.bf16.vlgmr.msrb.gmra.mxu1 %vm425_vm1, %v1704_v20 }
 0x5a9   : > { %2017 = vmatpush.bf16.xpose.msrb.mxu1 %v2008_v0 }
 0x5ab   : > { %v2921_v7 = vpop.eup %2920 }
 0x5ac   : > { %v1698_v30 = vmul.f32 %v2921_v7, %v3864_v14  ;;  %v1679_v36 = vpop.xlane.xlu2 %1678  ;;  %v2031_v14 = vsel %vm425_vm1, %v2026_v60, 0 }
 0x5ad   : > { %2922 = vrcp.f32 %v1679_v36 }
 0x5ae   : > { %v1706_v16 = vpack.c.bf16 %v1698_v30, %v1698_v30 }
 0x5af   : > { %v3940_v62 = vpop.f32.mrf.mxu1 }
 0x5b0   : > { %2735 = vmatmul.msk.bf16.vlgmr.msra.gmra.mxu3 %vm425_vm1, %v1706_v16 }
 0x5b3   : > { %v2923_v19 = vpop.eup %2922 }
 0x5b4   : > { %v1697_v26 = vmul.f32 %v2923_v19, %v3876_v41  ;;  %v1980_v58 = vpop.permute.xlu1 %1979  ;;  %v2049_v15 = vpop.permute.xlu2 %2048 }
 0x5b5   : > { %v1985_v61 = vsel %vm425_vm1, %v1980_v58, 0  ;;  %v2054_v43 = vsel %vm425_vm1, %v2049_v15, 0  ;;  %v2095_v41 = vpop.permute.xlu0 %2094 }
 0x5b6   : > { %v1705_v5 = vpack.c.bf16 %v1697_v26, %v1697_v26  ;;  %1994 = vmatpush.bf16.xpose.msrb.mxu3 %v1985_v61  ;;  %v2100_v6 = vsel %vm425_vm1, %v2095_v41, 0 }
 0x5b7   : > { %v1747_v57 = vpop.f32.mrf.mxu1 }
 0x5b8   : > { %2734 = vmatmul.msk.bf16.vlgmr.msra.gmra.mxu2 %vm425_vm1, %v1705_v5  ;;  %2740 = vmatmul.msk.bf16.vlgmr.msra.gmra.mxu1 %vm425_vm1, %v1932_v49 }
 0x5b9   : > { %2040 = vmatpush.bf16.xpose.msra.mxu2 %v2031_v14 }
 0x5bc   : > { %v2047_v46 = vpop.permute.xlu2 %2046 }
 0x5bd   : > { %v2093_v39 = vpop.permute.xlu0 %2092 }
 0x5be   : > { %2063 = vmatpush.bf16.xpose.msra.mxu3 %v2054_v43 }
 0x5c0   : > { %2742 = vmatmul.msk.bf16.vlgmr.msrb.gmra.mxu3 %vm425_vm1, %v1978_v4 }
 0x5c4   : > { %v2072_v54 = vpop.permute.xlu2 %2071 }
 0x5c5   : > { %v2077_v53 = vsel %vm425_vm1, %v2072_v54, 0  ;;  %v2070_v44 = vpop.permute.xlu0 %2069 }
 0x5c6   : > { %2086 = vmatpush.bf16.xpose.msra.mxu1 %v2077_v53 }
 0x5c8   : > { %2741 = vmatmul.msk.bf16.vlgmr.msrb.gmra.mxu2 %vm425_vm1, %v1955_v29  ;;  %2743 = vmatmul.msk.bf16.vlgmr.msrb.gmra.mxu1 %vm425_vm1, %v2001_v59 }
 0x5c9   : > { %2109 = vmatpush.bf16.xpose.msrb.mxu2 %v2100_v6 }
 0x5cd   : > { %v1708_v14 = vpop.permute.xlu0 %1707 }
 0x5ce   : > { %v1713_v57 = vsel %vm681_vm5, %v1708_v14, 0 }
 0x5cf   : > { %1722 = vmatpush.bf16.msra.mxu0 %v1713_v57 }
 0x5d0   : > { %2745 = vmatmul.msk.bf16.vlgmr.msra.gmra.mxu3 %vm425_vm1, %v2047_v46 }
 0x5d8   : > { %2746 = vmatmul.msk.bf16.vlgmr.msra.gmra.mxu1 %vm425_vm1, %v2070_v44  ;;  %2744 = vmatmul.msk.bf16.vlgmr.msra.gmra.mxu2 %vm425_vm1, %v2024_v35 }
 0x5df   : > { %v1613_v3 = vpop.xlane.xlu1 %1612 }
 0x5e0   : > { %v1635_v33 = vsub.f32 %v3905_v1, %v1613_v3 }
 0x5e2   : > { %v1643_v27 = vmul.f32 1.442695, %v1635_v33 }
 0x5e4   : > { %2924 = vpow2.f32 %v1643_v27 }
 0x5e6   : > { %v3958_v42 = vpop.f32.mrf.mxu3 }
 0x5e8   : > { %2747 = vmatmul.msk.bf16.vlgmr.msrb.gmra.mxu2 %vm425_vm1, %v2093_v39 }
 0x5ea   : > { %v2925_v29 = vpop.eup %2924 }
 0x5eb   : > { %v1659_v49 = vsel %vm425_vm1, %v2925_v29, 0.0 }
 0x5ec   : > { %1660 = vadd.xlane.f32.xlu1 %v1659_v49 }
 0x5ee   : > { %v3962_v4 = vpop.f32.mrf.mxu2  ;;  %v1789_v9 = vpop.f32.mrf.mxu3 }
 0x5ef   : > { %v1876_v10 = vpack.c.bf16 %v3958_v42, %v3962_v4 }
 0x5f6   : > { %v1768_v45 = vpop.f32.mrf.mxu2 }
 0x5fd   : > { %v1625_v59 = vpop.xlane.xlu2 %1624 }
 0x5fe   : > { %v1639_v1 = vsub.f32 %v3920_v48, %v1625_v59 }
 0x600   : > { %v1651_v50 = vmul.f32 1.442695, %v1639_v1 }
 0x602   : > { %2926 = vpow2.f32 %v1651_v50 }
 0x605   : > { %v2212_v57 = vpop.permute.xlu2 %2211 }
 0x608   : > { %v2927_v38 = vpop.eup %2926 }
 0x609   : > { %v1671_v20 = vsel %vm425_vm1, %v2927_v38, 0.0 }
 0x60a   : > { %1672 = vadd.xlane.f32.xlu1 %v1671_v20 }
 0x625   : > { %v3968_v0 = vpop.f32.mrf.mxu1 }
 0x62d   : > { %v1831_v7 = vpop.f32.mrf.mxu1 }
 0x633   : > { %v3970_v30 = vpop.f32.mrf.mxu3 }
 0x635   : > { %v1950_v36 = vpop.f32.mrf.mxu1 }
 0x636   : > { %v3973_v60 = vadd.f32 %v1950_v36, %v3265_v18 }
 0x638   : > { %v2115_v16 = vsel %vm425_vm1, %v3973_v60, -inf }
 0x639   : > { %2116 = vmax.xlane.f32.xlu1 %v2115_v16 }
 0x63b   : > { %v3977_v48 = vpop.f32.mrf.mxu2  ;;  %v1873_v19 = vpop.f32.mrf.mxu3 }
 0x63c   : > { %v1878_v26 = vpack.c.bf16 %v3970_v30, %v3977_v48 }
 0x63d   : > { %v1952_v58 = vpop.f32.mrf.mxu1 }
 0x643   : > { %v1852_v15 = vpop.f32.mrf.mxu2  ;;  %v1996_v61 = vpop.f32.mrf.mxu3 }
 0x644   : > { %v3988_v41 = vadd.f32 %v1996_v61, %v3278_v24 }
 0x645   : > { %v2019_v43 = vpop.f32.mrf.mxu1 }
 0x646   : > { %v3982_v5 = vadd.f32 %v2019_v43, %v3281_v28  ;;  %v2121_v6 = vsel %vm425_vm1, %v3988_v41, -inf }
 0x648   : > { %v2124_v18 = vsel %vm425_vm1, %v3982_v5, -inf }
 0x649   : > { %2125 = vmax.xlane.f32.xlu1 %v2124_v18 }
 0x64b   : > { %v1973_v35 = vpop.f32.mrf.mxu2  ;;  %v1998_v46 = vpop.f32.mrf.mxu3 }
 0x64c   : > { %v3991_v54 = vadd.f32 %v1973_v35, %v3464_v32 }
 0x64d   : > { %v2021_v53 = vpop.f32.mrf.mxu1 }
 0x64e   : > { %v2118_v28 = vsel %vm425_vm1, %v3991_v54, -inf }
 0x64f   : > { %2119 = vmax.xlane.f32.xlu0 %v2118_v28 }
 0x651   : > { %2122 = vmax.xlane.f32.xlu1 %v2121_v6 }
 0x653   : > { %v1975_v39 = vpop.f32.mrf.mxu2  ;;  %v2065_v44 = vpop.f32.mrf.mxu3 }
 0x655   : > { %v2088_v3 = vpop.f32.mrf.mxu1 }
 0x656   : > { %v3998_v33 = vadd.f32 %v2088_v3, %v3330_v34  ;;  %v1792_v34 = vpop.permute.xlu0 %1791 }
 0x657   : > { %v1797_v20 = vsel %vm681_vm5, %v1792_v34, 0 }
 0x658   : > { %v2133_v24 = vsel %vm425_vm1, %v3998_v33, -inf  ;;  %1806 = vmatpush.bf16.msrb.mxu0 %v1797_v20  ;;  %v423_v20 = vld [vmem:[%s4268_s3 + $0x8] sm:$0xf] }
 0x659   : > { %2134 = vmax.xlane.f32.xlu2 %v2133_v24 }
 0x65b   : > { %v2042_v32 = vpop.f32.mrf.mxu2  ;;  %v2067_v27 = vpop.f32.mrf.mxu3 }
 0x65c   : > { %v4003_v49 = vadd.f32 %v2042_v32, %v3422_v13 }
 0x65d   : > { %v2090_v9 = vpop.f32.mrf.mxu1 }
 0x65e   : > { %v2127_v45 = vsel %vm425_vm1, %v4003_v49, -inf  ;;  %v2254_v43 = vpop.permute.xlu0 %2253 }
 0x65f   : > { %v1661_v59 = vpop.xlane.xlu1 %1660  ;;  %v2259_v14 = vsel %vm681_vm5, %v2254_v43, 0 }
 0x660   : > { %2928 = vrcp.f32 %v1661_v59  ;;  %2268 = vmatpush.bf16.msra.mxu2 %v2259_v14 }
 0x661   : > { %2128 = vmax.xlane.f32.xlu2 %v2127_v45 }
 0x663   : > { %v2044_v1 = vpop.f32.mrf.mxu2  ;;  %2295 = vrot.lane.b32.xlu0 %v3494_v8, %s3054_s7  ;;  %v4015_v8 = vadd.f32 %v2065_v44, %v3425_v47  ;;  %v2217_v47 = vsel %vm681_vm5, %v2212_v57, 0 }
 0x664   : > { %2226 = vmatpush.bf16.msrb.mxu3 %v2217_v47 }
 0x666   : > { %v2929_v50 = vpop.eup %2928 }
 0x667   : > { %v1691_v7 = vmul.f32 %v2929_v50, %v2925_v29  ;;  %v2130_v29 = vsel %vm425_vm1, %v4015_v8, -inf }
 0x669   : > { %v1699_v36 = vpack.c.bf16 %v1691_v7, %v1691_v7  ;;  %v1892_v7 = vsel %vm681_vm5, %v423_v20, 0 }
 0x66a   : > { %2232 = vrot.lane.b32.xlu1 %v3446_v56, %s3054_s7 }
 0x66b   : > { %2728 = vmatmul.msk.bf16.vlgmr.msra.gmra.mxu0 %vm425_vm1, %v1699_v36  ;;  %v2111_v13 = vpop.f32.mrf.mxu2 }
 0x66c   : > { %v4020_v56 = vadd.f32 %v2111_v13, %v3310_v51  ;;  %1901 = vmatpush.bf16.msra.mxu0 %v1892_v7 }
 0x66e   : > { %v2136_v18 = vsel %vm425_vm1, %v4020_v56, -inf }
 0x673   : > { %v2113_v16 = vpop.f32.mrf.mxu2 }
 0x67d   : > { %v1673_v19 = vpop.xlane.xlu1 %1672 }
 0x67e   : > { %2930 = vrcp.f32 %v1673_v19 }
 0x684   : > { %v2931_v58 = vpop.eup %2930 }
 0x685   : > { %v1695_v15 = vmul.f32 %v2931_v58, %v2927_v38  ;;  %v4025_v38 = vpop.f32.mrf.mxu0 }
 0x687   : > { %v1703_v61 = vpack.c.bf16 %v1695_v15, %v1695_v15 }
 0x689   : > { %2732 = vmatmul.msk.bf16.vlgmr.msrb.gmra.mxu0 %vm425_vm1, %v1703_v61 }
 0x68d   : > { %v4028_v35 = vpop.f32.mrf.mxu0 }
 0x694   : > { %2131 = vmax.xlane.f32.xlu1 %v2130_v29 }
 0x695   : > { %v4031_v28 = vpop.f32.mrf.mxu0 }
 0x69c   : > { %2137 = vmax.xlane.f32.xlu1 %v2136_v18 }
 0x69d   : > { %v4037_v44 = vpop.f32.mrf.mxu0 }
 0x6a5   : > { %v4040_v27 = vpop.f32.mrf.mxu0 }
 0x6ac   : > { %v2117_v46 = vpop.xlane.xlu1 %2116 }
 0x6ad   : > { %v2139_v51 = vsub.f32 %v3973_v60, %v2117_v46 }
 0x6af   : > { %v2147_v53 = vmul.f32 1.442695, %v2139_v51 }
 0x6b1   : > { %2932 = vpow2.f32 %v2147_v53 }
 0x6b7   : > { %v4033_v6 = vpop.eup %2932 }
 0x6b8   : > { %v2163_v39 = vsel %vm425_vm1, %v4033_v6, 0.0 }
 0x6b9   : > { %2164 = vadd.xlane.f32.xlu2 %v2163_v39 }
 0x6bc   : > { %v2126_v3 = vpop.xlane.xlu1 %2125 }
 0x6bd   : > { %v2142_v24 = vsub.f32 %v3982_v5, %v2126_v3 }
 0x6bf   : > { %v2153_v32 = vmul.f32 1.442695, %v2142_v24 }
 0x6c1   : > { %2934 = vpow2.f32 %v2153_v32 }
 0x6c2   : > { %v2120_v60 = vpop.xlane.xlu0 %2119 }
 0x6c3   : > { %v2140_v9 = vsub.f32 %v3991_v54, %v2120_v60  ;;  %v4052_v54 = vpop.f32.mrf.mxu0 }
 0x6c4   : > { %v2123_v45 = vpop.xlane.xlu1 %2122 }
 0x6c5   : > { %v2149_v59 = vmul.f32 1.442695, %v2140_v9  ;;  %v2141_v1 = vsub.f32 %v3988_v41, %v2123_v45 }
 0x6c7   : > { %v4044_v34 = vpop.eup %2934  ;;  %2936 = vpow2.f32 %v2149_v59  ;;  %v2151_v50 = vmul.f32 1.442695, %v2141_v1 }
 0x6c8   : > { %v2172_v5 = vsel %vm425_vm1, %v4044_v34, 0.0 }
 0x6c9   : > { %2938 = vpow2.f32 %v2151_v50  ;;  %2173 = vadd.xlane.f32.xlu0 %v2172_v5 }
 0x6cb   : > { %v4065_v61 = vpop.f32.mrf.mxu0 }
 0x6cc   : > { %v2135_v36 = vpop.xlane.xlu2 %2134 }
 0x6cd   : > { %v4054_v41 = vpop.eup %2936  ;;  %v2145_v51 = vsub.f32 %v3998_v33, %v2135_v36 }
 0x6ce   : > { %v2166_v13 = vsel %vm425_vm1, %v4054_v41, 0.0 }
 0x6cf   : > { %v4058_v16 = vpop.eup %2938  ;;  %2167 = vadd.xlane.f32.xlu1 %v2166_v13  ;;  %v2159_v53 = vmul.f32 1.442695, %v2145_v51 }
 0x6d0   : > { %v2169_v19 = vsel %vm425_vm1, %v4058_v16, 0.0 }
 0x6d1   : > { %2170 = vadd.xlane.f32.xlu0 %v2169_v19  ;;  %2274 = vrot.lane.b32.xlu2 %v3316_v55, %s3054_s7 }
 0x6d3   : > { %v4070_v57 = vpop.f32.mrf.mxu0 }
 0x6d4   : > { %v2129_v58 = vpop.xlane.xlu2 %2128 }
 0x6d5   : > { %v2143_v15 = vsub.f32 %v4003_v49, %v2129_v58  ;;  %v2296_v33 = vpop.permute.xlu0 %2295 }
 0x6d6   : > { %v2301_v9 = vsel %vm681_vm5, %v2296_v33, 0 }
 0x6d7   : > { %v2155_v29 = vmul.f32 1.442695, %v2143_v15  ;;  %2310 = vmatpush.bf16.msrb.mxu0 %v2301_v9 }
 0x6d9   : > { %2940 = vpow2.f32 %v2155_v29 }
 0x6da   : > { %2942 = vpow2.f32 %v2159_v53 }
 0x6dc   : > { %v2233_v43 = vpop.permute.xlu1 %2232 }
 0x6dd   : > { %v2238_v14 = vsel %vm681_vm5, %v2233_v43, 0 }
 0x6de   : > { %2247 = vmatpush.bf16.msrb.mxu1 %v2238_v14 }
 0x6df   : > { %v4068_v18 = vpop.eup %2940 }
 0x6e0   : > { %v2175_v47 = vsel %vm425_vm1, %v4068_v18, 0.0 }
 0x6e1   : > { %2176 = vadd.xlane.f32.xlu1 %v2175_v47 }
 0x6e5   : > { %2316 = vrot.lane.b32.xlu0 %v3489_v31, %s3054_s7 }
 0x6e8   : > { %v1724_v55 = vpop.f32.mrf.mxu0 }
 0x6e9   : > { %v1875_v49 = vpack.c.bf16 %v3940_v62, %v1724_v55  ;;  %v4085_v62 = vpop.eup %2942 }
 0x6ea   : > { %v2181_v42 = vsel %vm425_vm1, %v4085_v62, 0.0 }
 0x6eb   : > { %2736 = vmatmul.msk.bf16.vlgmr.msra.gmra.mxu0 %vm425_vm1, %v1875_v49 }
 0x6f0   : > { %v1726_v46 = vpop.f32.mrf.mxu0 }
 0x6fb   : > { %2737 = vmatmul.msk.bf16.gmra.mxu0 %vm425_vm1, %v1876_v10 }
 0x706   : > { %v1808_v39 = vpop.f32.mrf.mxu0 }
 0x707   : > { %v2132_v3 = vpop.xlane.xlu1 %2131  ;;  %v1877_v31 = vpack.c.bf16 %v3968_v0, %v1808_v39  ;;  %v1413_v39 = vadd.f32 %v3914_v21, %v4031_v28 }
 0x708   : > { %v2144_v24 = vsub.f32 %v4015_v8, %v2132_v3 }
 0x70a   : > { %v2157_v32 = vmul.f32 1.442695, %v2144_v24 }
 0x70b   : > { %2738 = vmatmul.msk.bf16.gmra.mxu0 %vm425_vm1, %v1877_v31 }
 0x70c   : > { %2944 = vpow2.f32 %v2157_v32  ;;  %v1418_v32 = vadd.f32 %v3922_v63, %v4040_v27  ;;  %v1423_v63 = vadd.f32 %v3928_v17, %v4065_v61  ;;  %v424_v17 = vld [vmem:[%s4268_s3 + $0xc] sm:$0xf] }
 0x70d   : > { %v2396_v61 = vsel %vm681_vm5, %v424_v17, 0 }
 0x70e   : > { %v1810_v60 = vpop.f32.mrf.mxu0  ;;  %2405 = vmatpush.bf16.msra.mxu0 %v2396_v61 }
 0x70f   : > { %v2138_v4 = vpop.xlane.xlu1 %2137  ;;  %2182 = vadd.xlane.f32.xlu0 %v2181_v42 }
 0x710   : > { %v2146_v10 = vsub.f32 %v4020_v56, %v2138_v4 }
 0x712   : > { %v4092_v8 = vpop.eup %2944  ;;  %v2161_v0 = vmul.f32 1.442695, %v2146_v10 }
 0x713   : > { %v2178_v45 = vsel %vm425_vm1, %v4092_v8, 0.0 }
 0x714   : > { %2946 = vpow2.f32 %v2161_v0  ;;  %2179 = vadd.xlane.f32.xlu2 %v2178_v45 }
 0x71a   : > { %v4096_v59 = vpop.eup %2946 }
 0x71b   : > { %2739 = vmatmul.msk.bf16.gmra.mxu0 %vm425_vm1, %v1878_v26  ;;  %v2184_v56 = vsel %vm425_vm1, %v4096_v59, 0.0 }
 0x71c   : > { %2185 = vadd.xlane.f32.xlu1 %v2184_v56 }
 0x72c   : > { %v2165_v1 = vpop.xlane.xlu2 %2164  ;;  %2337 = vrot.lane.b32.xlu2 %v3348_v22, %s3054_s7 }
 0x72d   : > { %2948 = vrcp.f32 %v2165_v1 }
 0x733   : > { %v2949_v50 = vpop.eup %2948 }
 0x734   : > { %v2195_v20 = vmul.f32 %v2949_v50, %v4033_v6  ;;  %v2275_v5 = vpop.permute.xlu2 %2274 }
 0x735   : > { %2358 = vrot.lane.b32.xlu1 %v3373_v52, %s3054_s7  ;;  %v2280_v30 = vsel %vm681_vm5, %v2275_v5, 0 }
 0x736   : > { %v2203_v48 = vpack.c.bf16 %v2195_v20, %v2195_v20  ;;  %2289 = vmatpush.bf16.msra.mxu3 %v2280_v30 }
 0x738   : > { %2748 = vmatmul.msk.bf16.vlgmr.msrb.gmra.mxu3 %vm425_vm1, %v2203_v48 }
 0x73c   : > { %v2174_v26 = vpop.xlane.xlu0 %2173 }
 0x73d   : > { %2950 = vrcp.f32 %v2174_v26 }
 0x742   : > { %v2168_v7 = vpop.xlane.xlu1 %2167 }
 0x743   : > { %v2951_v36 = vpop.eup %2950  ;;  %2952 = vrcp.f32 %v2168_v7 }
 0x744   : > { %v2198_v22 = vmul.f32 %v2951_v36, %v4044_v34  ;;  %v2171_v13 = vpop.xlane.xlu0 %2170 }
 0x745   : > { %2954 = vrcp.f32 %v2171_v13 }
 0x746   : > { %v2206_v6 = vpack.c.bf16 %v2198_v22, %v2198_v22 }
 0x748   : > { %2751 = vmatmul.msk.bf16.vlgmr.msra.gmra.mxu3 %vm425_vm1, %v2206_v6 }
 0x749   : > { %v2953_v19 = vpop.eup %2952 }
 0x74a   : > { %v2196_v52 = vmul.f32 %v2953_v19, %v4054_v41  ;;  %v1408_v41 = vadd.f32 %v3894_v23, %v4025_v38 }
 0x74b   : > { %v2955_v58 = vpop.eup %2954 }
 0x74c   : > { %v2204_v15 = vpack.c.bf16 %v2196_v52, %v2196_v52  ;;  %v2197_v29 = vmul.f32 %v2955_v58, %v4058_v16 }
 0x74e   : > { %v2205_v43 = vpack.c.bf16 %v2197_v29, %v2197_v29  ;;  %2749 = vmatmul.msk.bf16.vlgmr.msrb.gmra.mxu1 %vm425_vm1, %v2204_v15 }
 0x750   : > { %2750 = vmatmul.msk.bf16.vlgmr.msra.gmra.mxu2 %vm425_vm1, %v2205_v43 }
 0x754   : > { %v2177_v14 = vpop.xlane.xlu1 %2176 }
 0x755   : > { %2956 = vrcp.f32 %v2177_v14 }
 0x757   : > { %v2317_v34 = vpop.permute.xlu0 %2316 }
 0x758   : > { %v2322_v47 = vsel %vm681_vm5, %v2317_v34, 0 }
 0x759   : > { %2331 = vmatpush.bf16.msra.mxu1 %v2322_v47 }
 0x75b   : > { %v2957_v55 = vpop.eup %2956 }
 0x75c   : > { %v2199_v49 = vmul.f32 %v2957_v55, %v4068_v18 }
 0x75e   : > { %v2207_v46 = vpack.c.bf16 %v2199_v49, %v2199_v49 }
 0x760   : > { %2752 = vmatmul.msk.bf16.vlgmr.msrb.gmra.mxu0 %vm425_vm1, %v2207_v46 }
 0x768   : > { %v1903_v16 = vpop.f32.mrf.mxu0 }
 0x769   : > { %v4122_v51 = vadd.f32 %v1903_v16, %v1408_v41 }
 0x770   : > { %v4124_v53 = vpop.f32.mrf.mxu0 }
 0x778   : > { %v1908_v3 = vpop.f32.mrf.mxu0 }
 0x779   : > { %v4128_v24 = vadd.f32 %v1908_v3, %v1413_v39 }
 0x780   : > { %v4130_v31 = vpop.f32.mrf.mxu0 }
 0x782   : > { %v2183_v18 = vpop.xlane.xlu0 %2182 }
 0x783   : > { %2958 = vrcp.f32 %v2183_v18  ;;  %v1410_v18 = vadd.f32 %v3909_v40, %v4028_v35 }
 0x787   : > { %v2180_v60 = vpop.xlane.xlu2 %2179 }
 0x788   : > { %2960 = vrcp.f32 %v2180_v60  ;;  %v1913_v23 = vpop.f32.mrf.mxu0 }
 0x789   : > { %v4134_v38 = vadd.f32 %v1913_v23, %v1418_v32  ;;  %v2959_v42 = vpop.eup %2958  ;;  %v1924_v23 = vadd.f32 %v4124_v53, %v1410_v18 }
 0x78a   : > { %v2201_v10 = vmul.f32 %v2959_v42, %v4085_v62 }
 0x78c   : > { %v2209_v45 = vpack.c.bf16 %v2201_v10, %v2201_v10  ;;  %v1415_v10 = vadd.f32 %v3916_v37, %v4037_v44 }
 0x78e   : > { %v2961_v4 = vpop.eup %2960 }
 0x78f   : > { %v2200_v21 = vmul.f32 %v2961_v4, %v4092_v8  ;;  %v2338_v28 = vpop.permute.xlu2 %2337  ;;  %v2186_v62 = vpop.xlane.xlu1 %2185  ;;  %v1425_v8 = vadd.f32 %v3935_v12, %v4070_v57 }
 0x790   : > { %v2343_v33 = vsel %vm681_vm5, %v2338_v28, 0  ;;  %v4139_v9 = vpop.f32.mrf.mxu0  ;;  %2962 = vrcp.f32 %v2186_v62 }
 0x791   : > { %v2208_v0 = vpack.c.bf16 %v2200_v21, %v2200_v21  ;;  %2352 = vmatpush.bf16.msrb.mxu2 %v2343_v33 }
 0x793   : > { %2753 = vmatmul.msk.bf16.vlgmr.msra.gmra.mxu1 %vm425_vm1, %v2208_v0 }
 0x794   : > { %2754 = vmatmul.msk.bf16.vlgmr.msrb.gmra.mxu2 %vm425_vm1, %v2209_v45 }
 0x796   : > { %v2963_v20 = vpop.eup %2962 }
 0x797   : > { %v2202_v5 = vmul.f32 %v2963_v20, %v4096_v59 }
 0x798   : > { %v1918_v27 = vpop.f32.mrf.mxu0 }
 0x799   : > { %v4145_v56 = vadd.f32 %v1918_v27, %v1423_v63  ;;  %v2210_v26 = vpack.c.bf16 %v2202_v5, %v2202_v5 }
 0x7a0   : > { %v1920_v1 = vpop.f32.mrf.mxu0 }
 0x7a1   : > { %v4149_v50 = vadd.f32 %v1920_v1, %v1425_v8 }
 0x7a7   : > { %v2359_v30 = vpop.permute.xlu1 %2358 }
 0x7a8   : > { %v2364_v48 = vsel %vm681_vm5, %v2359_v30, 0 }
 0x7a9   : > { %2373 = vmatpush.bf16.msrb.mxu3 %v2364_v48 }
 0x7ac   : > { %2755 = vmatmul.msk.bf16.vlgmr.msrb.gmra.mxu3 %vm425_vm1, %v2210_v26 }
 0x7bb   : > { %v2228_v12 = vpop.f32.mrf.mxu3 }
 0x7c3   : > { %v2230_v57 = vpop.f32.mrf.mxu3 }
 0x7cb   : > { %v2249_v7 = vpop.f32.mrf.mxu1  ;;  %v2291_v36 = vpop.f32.mrf.mxu3 }
 0x7cc   : > { %v2379_v22 = vpack.c.bf16 %v2249_v7, %v2228_v12  ;;  %v1420_v12 = vadd.f32 %v3926_v2, %v4052_v54 }
 0x7ce   : > { %2756 = vmatmul.msk.bf16.vlgmr.msra.gmra.mxu0 %vm425_vm1, %v2379_v22 }
 0x7d3   : > { %v2251_v59 = vpop.f32.mrf.mxu1  ;;  %v2270_v13 = vpop.f32.mrf.mxu2 }
 0x7d4   : > { %v2293_v6 = vpop.f32.mrf.mxu3  ;;  %v2380_v52 = vpack.c.bf16 %v2291_v36, %v2270_v13  ;;  %v1928_v36 = vadd.f32 %v4139_v9, %v1420_v12 }
 0x7db   : > { %v2272_v19 = vpop.f32.mrf.mxu2 }
 0x7dd   : > { %v2312_v58 = vpop.f32.mrf.mxu0 }
 0x7de   : > { %2757 = vmatmul.msk.bf16.gmra.mxu0 %vm425_vm1, %v2380_v52 }
 0x7e5   : > { %v2314_v15 = vpop.f32.mrf.mxu0 }
 0x810   : > { %v2333_v29 = vpop.f32.mrf.mxu1 }
 0x811   : > { %v2381_v43 = vpack.c.bf16 %v2333_v29, %v2312_v58 }
 0x813   : > { %2758 = vmatmul.msk.bf16.gmra.mxu0 %vm425_vm1, %v2381_v43 }
 0x817   : > { %v2354_v14 = vpop.f32.mrf.mxu2 }
 0x818   : > { %v2335_v34 = vpop.f32.mrf.mxu1 }
 0x81f   : > { %v2356_v47 = vpop.f32.mrf.mxu2 }
 0x82f   : > { %v2375_v55 = vpop.f32.mrf.mxu3 }
 0x830   : > { %v2382_v49 = vpack.c.bf16 %v2375_v55, %v2354_v14 }
 0x832   : > { %2759 = vmatmul.msk.bf16.gmra.mxu0 %vm425_vm1, %v2382_v49  ;;  %vm2548_vm1 = vcmask 261120  }
 0x837   : > { %v2377_v46 = vpop.f32.mrf.mxu3 }
 0x84b   : > { %v2407_v41 = vpop.f32.mrf.mxu0 }
 0x84c   : > { %v2427_v39 = vadd.f32 %v2407_v41, %v4122_v51  ;;  %v1926_v51 = vadd.f32 %v4130_v31, %v1415_v10 }
 0x84e   : > { %v2438_v32 = vrot.slane %v2427_v39, 4 }
 0x853   : > { %v2409_v16 = vpop.f32.mrf.mxu0 }
 0x854   : > { %v2428_v21 = vadd.f32 %v2409_v16, %v1924_v23 }
 0x856   : > { %v2450_v40 = vrot.slane %v2428_v21, 4 }
 0x85b   : > { %v2412_v3 = vpop.f32.mrf.mxu0 }
 0x85c   : > { %v2429_v60 = vadd.f32 %v2412_v3, %v4128_v24 }
 0x85e   : > { %v2435_v42 = vrot.slane %v2429_v60, 4  ;;  %v2439_v4 = vsel %vm341_vm0, %v2429_v60, %v2438_v32 }
 0x85f   : > { %v2447_v33 = vperm.slane %v2439_v4, %v3147_v11 }
 0x860   : > { %v2437_v28 = vsel %vm341_vm0, %v2435_v42, %v2427_v39 }
 0x861   : > { %v2443_v24 = vperm.slane %v2437_v28, %v3147_v11  ;;  %v2498_v63 = vrot.slane %v2447_v33, 4 }
 0x863   : > { %v2414_v0 = vpop.f32.mrf.mxu0  ;;  %v2486_v44 = vrot.slane %v2443_v24, 4 }
 0x864   : > { %v2430_v35 = vadd.f32 %v2414_v0, %v1926_v51 }
 0x866   : > { %v2448_v45 = vrot.slane %v2430_v35, 4  ;;  %v2451_v53 = vsel %vm341_vm0, %v2430_v35, %v2450_v40 }
 0x867   : > { %v2459_v27 = vperm.slane %v2451_v53, %v3147_v11 }
 0x868   : > { %v2449_v37 = vsel %vm341_vm0, %v2448_v45, %v2428_v21 }
 0x869   : > { %v2455_v62 = vperm.slane %v2449_v37, %v3147_v11  ;;  %v2496_v8 = vrot.slane %v2459_v27, 4  ;;  %v2499_v31 = vsel %vm341_vm0, %v2459_v27, %v2498_v63 }
 0x86a   : > { %v2507_v54 = vperm.slane %v2499_v31, %v3157_v25 }
 0x86b   : > { %v2484_v1 = vrot.slane %v2455_v62, 4  ;;  %v2487_v20 = vsel %vm341_vm0, %v2455_v62, %v2486_v44  ;;  %v2497_v5 = vsel %vm341_vm0, %v2496_v8, %v2447_v33 }
 0x86c   : > { %v2495_v15 = vperm.slane %v2487_v20, %v3157_v25  ;;  %v2503_v34 = vperm.slane %v2497_v5, %v3157_v25  ;;  %v2546_v41 = vrot.slane %v2507_v54, 4 }
 0x86d   : > { %v2485_v30 = vsel %vm341_vm0, %v2484_v1, %v2443_v24 }
 0x86e   : > { %v2491_v14 = vperm.slane %v2485_v30, %v3157_v25  ;;  %v2538_v39 = vrot.slane %v2495_v15, 4  ;;  %v2542_v10 = vrot.slane %v2503_v34, 4 }
 0x870   : > { %v2534_v4 = vrot.slane %v2491_v14, 4 }
 0x890   : > { %v2417_v48 = vpop.f32.mrf.mxu0 }
 0x891   : > { %v2431_v17 = vadd.f32 %v2417_v48, %v4134_v38 }
 0x893   : > { %v2462_v57 = vrot.slane %v2431_v17, 4 }
 0x898   : > { %v2419_v26 = vpop.f32.mrf.mxu0 }
 0x899   : > { %v2432_v13 = vadd.f32 %v2419_v26, %v1928_v36 }
 0x89b   : > { %v2474_v38 = vrot.slane %v2432_v13, 4 }
 0x8af   : > { %v2422_v61 = vpop.f32.mrf.mxu0 }
 0x8b0   : > { %v2433_v7 = vadd.f32 %v2422_v61, %v4145_v56 }
 0x8b2   : > { %v2460_v22 = vrot.slane %v2433_v7, 4  ;;  %v2463_v59 = vsel %vm341_vm0, %v2433_v7, %v2462_v57 }
 0x8b3   : > { %v2471_v19 = vperm.slane %v2463_v59, %v3147_v11 }
 0x8b4   : > { %v2461_v6 = vsel %vm341_vm0, %v2460_v22, %v2431_v17 }
 0x8b5   : > { %v2467_v2 = vperm.slane %v2461_v6, %v3147_v11  ;;  %v2522_v29 = vrot.slane %v2471_v19, 4 }
 0x8b7   : > { %v2424_v52 = vpop.f32.mrf.mxu0  ;;  %v2510_v47 = vrot.slane %v2467_v2, 4 }
 0x8b8   : > { %v2434_v58 = vadd.f32 %v2424_v52, %v4149_v50 }
 0x8ba   : > { %v2472_v9 = vrot.slane %v2434_v58, 4  ;;  %v2475_v56 = vsel %vm341_vm0, %v2434_v58, %v2474_v38 }
 0x8bb   : > { %v2483_v43 = vperm.slane %v2475_v56, %v3147_v11 }
 0x8bc   : > { %v2473_v50 = vsel %vm341_vm0, %v2472_v9, %v2432_v13 }
 0x8bd   : > { %v2479_v55 = vperm.slane %v2473_v50, %v3147_v11  ;;  %v2520_v49 = vrot.slane %v2483_v43, 4  ;;  %v2523_v46 = vsel %vm341_vm0, %v2483_v43, %v2522_v29 }
 0x8be   : > { %v2531_v16 = vperm.slane %v2523_v46, %v3157_v25 }
 0x8bf   : > { %v2508_v3 = vrot.slane %v2479_v55, 4  ;;  %v2511_v18 = vsel %vm341_vm0, %v2479_v55, %v2510_v47  ;;  %v2521_v32 = vsel %vm341_vm0, %v2520_v49, %v2471_v19 }
 0x8c0   : > { %v2519_v60 = vperm.slane %v2511_v18, %v3157_v25  ;;  %v2527_v23 = vperm.slane %v2521_v32, %v3157_v25  ;;  %v2544_v42 = vrot.slane %v2531_v16, 4  ;;  %v2547_v11 = vsel %vm341_vm0, %v2531_v16, %v2546_v41 }
 0x8c1   : > { %v2509_v21 = vsel %vm341_vm0, %v2508_v3, %v2467_v2  ;;  %2556 = vst.msk [vmem:[%s238_s24 + $0x38] sm:$0xff] %vm2548_vm1, %v2547_v11 }
 0x8c2   : > { %v2515_v28 = vperm.slane %v2509_v21, %v3157_v25  ;;  %v2536_v51 = vrot.slane %v2519_v60, 4  ;;  %v2539_v33 = vsel %vm341_vm0, %v2519_v60, %v2538_v39  ;;  %v2540_v0 = vrot.slane %v2527_v23, 4 }
 0x8c3   : > { %v2543_v40 = vsel %vm341_vm0, %v2527_v23, %v2542_v10  ;;  %v2545_v35 = vsel %vm341_vm0, %v2544_v42, %v2507_v54  ;;  %2552 = vst.msk [vmem:[%s238_s24 + $0x18] sm:$0xff] %vm2548_vm1, %v2539_v33 }
 0x8c4   : > { %v2532_v24 = vrot.slane %v2515_v28, 4  ;;  %v2535_v45 = vsel %vm341_vm0, %v2515_v28, %v2534_v4  ;;  %v2537_v53 = vsel %vm341_vm0, %v2536_v51, %v2495_v15  ;;  %v2541_v25 = vsel %vm341_vm0, %v2540_v0, %v2503_v34  ;;  %2554 = vst.msk [vmem:[%s238_s24 + $0x28] sm:$0xff] %vm2548_vm1, %v2543_v40 }
 0x8c5   : > { %2550 = vst.msk [vmem:[%s238_s24 + $0x8] sm:$0xff] %vm2548_vm1, %v2535_v45 }
 0x8c6   : > { %v2533_v63 = vsel %vm341_vm0, %v2532_v24, %v2491_v14  ;;  %2551 = vst.msk [vmem:[%s238_s24 + $0x10] sm:$0xff] %vm2548_vm1, %v2537_v53 }
 0x8c7   : > { %2549 = vst.msk [vmem:[%s238_s24] sm:$0xff] %vm2548_vm1, %v2533_v63 }
 0x8c8   : > { %2553 = vst.msk [vmem:[%s238_s24 + $0x20] sm:$0xff] %vm2548_vm1, %v2541_v25 }
 0x8c9   : > { %2555 = vst.msk [vmem:[%s238_s24 + $0x30] sm:$0xff] %vm2548_vm1, %v2545_v35 }
 0x8ca   : > { %2991 = shalt.err (!%p2988_p5)
}
 0x8cb   : > { %s3055_s12 = smov 128   ;;  %s3056_s13 = smov 8  }
 0x8cc   : > { %2768 = dma.vmem_to_hbm [thread:$0]  (%p3122_p4), %s2572_s26, 1024, %s2574_s29, %s2558_s30, %s3055_s12, %s3055_s12, %s3056_s13  }
 0x8cd PF: > { %p2774_p6 = scmp.ge.s32.totalorder %s3042_s20, 2  ;;  %s2588_s14 = sand.u32 1, %s3022_s15  }
 0x8ce   : > { %s2589_s21 = scalar_lea.sflag [#allocation3], %s2588_s14 }
 0x8cf   : > { %p2771_p7 = pnand %p2774_p6, %p3129_p8 }
 0x8d1   : > { %p2772_p9 = pneg %p2771_p7 }
 0x8d3   : > { %3017 = dma.done.wait (%p2772_p9), %s2589_s21, 1024  }
 0x8d4   : > { %3019 = vsyncadd (%p2772_p9), %s2589_s21, 4294966272  ;;  %s17_s20 = sadd.s32 1, %s3042_s20   ;;  %s4276_s15 = smov %s3026_s16 }
 0x8d5   : > { %p14_p10 = scmp.ge.s32.totalorder %s17_s20, 4   ;;  %s4277_s16 = smov %s3030_s17 }
 0x8d6   : > { %s4278_s17 = smov %s3135_s28  ;;  %s4279_s18 = smov %s3038_s19 }
 0x8d7   : > { %s4280_s19 = smov %s4282_s23  ;;  %16 = sbr.rel (!%p14_p10) target bundleno = 4 (0x4), region = 74 }
 0x8dc   :  { %2595 = vsyncpa [#allocation3], 1 }
 0x8dd   :  { %2597 = vsyncpa [#allocation3 + $0x1], 1 }

</bundles_post_ra>
